<compile_context>
chip_gen: v7x
topology: tpu7x:2x2x1
jax: 0.10.0
libtpu: 0.0.40
codegen_flags: <defaults>
</compile_context>

<pallas_src>
import jax
import jax.numpy as jnp
from jax.experimental import pallas as pl
from jax.experimental.pallas import tpu as pltpu

# ----------------------------- model config (small, synthetic) -----------------------------
BATCH = 2
SEQ = 8
HIDDEN = 32
HEADS = 2
HEAD_DIM = HIDDEN // HEADS
FFN = 64
VOCAB = 64
VOCAB_PAD = 128          # lane-dense output head (multiple of 128)
SEG_VOCAB = 3
SEG_PAD = 8              # sublane-aligned width for the segment one-hot / table
LAYERS = 2
ROWS = BATCH * SEQ
LN_EPS = 1e-6            # UER-py LayerNorm eps (Python float -> literal, not captured const)
MASK_VAL = -10000.0
NEG_INF = -1.0e30


# --------------------------------- in-kernel math helpers ----------------------------------
def _gelu(x):
    # tanh-form GELU (EUP tanh -> free VLIW slot); ~1e-3 max abs diff vs erf-based GELU.
    return 0.5 * x * (1.0 + jnp.tanh(0.7978845608028654 * (x + 0.044715 * x * x * x)))


def _layer_norm(x, g, b):
    mean = jnp.mean(x, axis=-1, keepdims=True)
    xc = x - mean
    var = jnp.mean(xc * xc, axis=-1, keepdims=True)
    return xc * jax.lax.rsqrt(var + LN_EPS) * g + b


# ----------------------------------- fused Pallas kernel -----------------------------------
def _generate_model_kernel(src_ref, seg_ref, seg2d_ref,
                           word_emb_ref, pos_emb_ref, seg_emb_ref,
                           emb_ln_g_ref, emb_ln_b_ref,
                           w_qkv_ref, b_qkv_ref, w_o_ref, b_o_ref,
                           ln1_g_ref, ln1_b_ref, w1_ref, b1_ref,
                           w2_ref, b2_ref, ln2_g_ref, ln2_b_ref,
                           out_w_ref, out_b_ref, prob_ref):
    f32 = jnp.float32
    bf16 = jnp.bfloat16

    # ---- embedding: one-hot matmul gathers on the MXU, merged over all B*S rows ----
    word_ids = src_ref[...]                                   # (ROWS, 1) int32
    seg_ids = seg_ref[...]                                    # (ROWS, 1) int32
    word_oh = (word_ids == jax.lax.broadcasted_iota(jnp.int32, (ROWS, VOCAB), 1)).astype(f32)
    seg_oh = (seg_ids == jax.lax.broadcasted_iota(jnp.int32, (ROWS, SEG_PAD), 1)).astype(f32)

    emb = jnp.dot(word_oh, word_emb_ref[...], preferred_element_type=f32)
    emb = emb + jnp.dot(seg_oh, seg_emb_ref[...], preferred_element_type=f32)
    pos = pos_emb_ref[...]                                    # (SEQ, HIDDEN)
    emb = emb + jnp.concatenate([pos] * BATCH, axis=0)        # tile over batch (sublane concat)

    h = _layer_norm(emb, emb_ln_g_ref[...], emb_ln_b_ref[...])    # (ROWS, HIDDEN) f32

    # ---- additive key-padding mask per batch, built in-kernel from seg (seg==0 -> masked) ----
    # NOTE: padded positions are only masked as keys (BERT-style); padded query rows still
    # produce probability rows, matching the original module's behavior.
    seg2d = seg2d_ref[...]                                    # (BATCH, SEQ) int32
    key_masks = [jnp.where(seg2d[b:b + 1, :] > 0, 0.0, MASK_VAL) for b in range(BATCH)]

    scale = 1.0 / (float(HEAD_DIM) ** 0.5)                    # Python float -> literal

    # ---- encoder layers (static unroll, LAYERS=2, all params VMEM-resident) ----
    for l in range(LAYERS):
        # fused QKV projection for all B*S rows: (16, 32) x (32, 96), bf16 MXU, f32 acc
        qkv = jnp.dot(h.astype(bf16), w_qkv_ref[l], preferred_element_type=f32) + b_qkv_ref[l]
        w_o_l = w_o_ref[l]                                    # (HIDDEN, HIDDEN) bf16

        attn_rows = []
        for b in range(BATCH):                                # static loop over batch
            qkv_b = qkv[b * SEQ:(b + 1) * SEQ, :]             # (SEQ, 3*HIDDEN) static sublane slice
            mb = key_masks[b]                                 # (1, SEQ)
            ab = None
            for hd in range(HEADS):                           # static loop over heads
                lo = hd * HEAD_DIM
                qh = qkv_b[:, lo:lo + HEAD_DIM]
                kh = qkv_b[:, HIDDEN + lo:HIDDEN + lo + HEAD_DIM]
                vh = qkv_b[:, 2 * HIDDEN + lo:2 * HIDDEN + lo + HEAD_DIM]
                # contract last dims directly ('sd,td->st'): no explicit transpose of k
                s = jax.lax.dot_general(qh, kh, (((1,), (1,)), ((), ())),
                                        preferred_element_type=f32) * scale
                s = s + mb
                s = s - jnp.max(s, axis=-1, keepdims=True)
                p = jnp.exp(s)
                p = p * pl.reciprocal(jnp.sum(p, axis=-1, keepdims=True), approx=True)
                ctx = jnp.dot(p, vh, preferred_element_type=f32)          # (SEQ, HEAD_DIM)
                # per-head output projection + accumulate (replaces lane-concat of heads)
                proj = jnp.dot(ctx.astype(bf16), w_o_l[lo:lo + HEAD_DIM, :],
                               preferred_element_type=f32)
                ab = proj if ab is None else ab + proj
            attn_rows.append(ab)
        attn_out = jnp.concatenate(attn_rows, axis=0) + b_o_ref[l]        # (ROWS, HIDDEN)
        h = _layer_norm(attn_out + h, ln1_g_ref[l], ln1_b_ref[l])         # post-LN residual

        # ---- feed-forward (gelu fused) ----
        ff = _gelu(jnp.dot(h.astype(bf16), w1_ref[l], preferred_element_type=f32) + b1_ref[l])
        ff = jnp.dot(ff.astype(bf16), w2_ref[l], preferred_element_type=f32) + b2_ref[l]
        h = _layer_norm(ff + h, ln2_g_ref[l], ln2_b_ref[l])

    # ---- target.output_layer -> gelu -> softmax(dim=-1), lane-dense (vocab padded to 128) ----
    logits = jnp.dot(h.astype(bf16), out_w_ref[...], preferred_element_type=f32) + out_b_ref[...]
    logits = _gelu(logits)
    lane = jax.lax.broadcasted_iota(jnp.int32, (ROWS, VOCAB_PAD), 1)
    logits = jnp.where(lane < VOCAB, logits, NEG_INF)          # kill padded lanes before softmax
    logits = logits - jnp.max(logits, axis=-1, keepdims=True)
    e = jnp.exp(logits)
    # exact reciprocal here so output rows sum to 1.0 tightly
    prob = e * pl.reciprocal(jnp.sum(e, axis=-1, keepdims=True), approx=False)
    prob_ref[...] = prob.astype(prob_ref.dtype)


# ------------------------------- parameter construction ------------------------------------
def init_params(key):
    def nrm(k, shape, scale=0.02):
        return scale * jax.random.normal(k, shape, dtype=jnp.float32)

    keys = iter(jax.random.split(key, 16))
    p = {}
    # embedding (word + position + segment) + layernorm; seg table padded to 8 rows (zeros)
    p["word_emb"] = nrm(next(keys), (VOCAB, HIDDEN))
    p["pos_emb"] = nrm(next(keys), (SEQ, HIDDEN))
    seg_emb = jnp.zeros((SEG_PAD, HIDDEN), jnp.float32)
    p["seg_emb"] = seg_emb.at[:SEG_VOCAB].set(nrm(next(keys), (SEG_VOCAB, HIDDEN)))
    p["emb_ln_g"] = jnp.ones((1, HIDDEN), jnp.float32)
    p["emb_ln_b"] = jnp.zeros((1, HIDDEN), jnp.float32)
    # transformer layers, stacked along a leading LAYERS axis; matmul weights in bf16
    p["w_qkv"] = nrm(next(keys), (LAYERS, HIDDEN, 3 * HIDDEN)).astype(jnp.bfloat16)
    p["b_qkv"] = jnp.zeros((LAYERS, 1, 3 * HIDDEN), jnp.float32)
    p["w_o"] = nrm(next(keys), (LAYERS, HIDDEN, HIDDEN)).astype(jnp.bfloat16)
    p["b_o"] = jnp.zeros((LAYERS, 1, HIDDEN), jnp.float32)
    p["ln1_g"] = jnp.ones((LAYERS, 1, HIDDEN), jnp.float32)
    p["ln1_b"] = jnp.zeros((LAYERS, 1, HIDDEN), jnp.float32)
    p["w1"] = nrm(next(keys), (LAYERS, HIDDEN, FFN)).astype(jnp.bfloat16)
    p["b1"] = jnp.zeros((LAYERS, 1, FFN), jnp.float32)
    p["w2"] = nrm(next(keys), (LAYERS, FFN, HIDDEN)).astype(jnp.bfloat16)
    p["b2"] = jnp.zeros((LAYERS, 1, HIDDEN), jnp.float32)
    p["ln2_g"] = jnp.ones((LAYERS, 1, HIDDEN), jnp.float32)
    p["ln2_b"] = jnp.zeros((LAYERS, 1, HIDDEN), jnp.float32)
    # target.output_layer: Linear(hidden, vocab), zero-padded to 128 output lanes
    out_w = jnp.zeros((HIDDEN, VOCAB_PAD), jnp.float32)
    out_w = out_w.at[:, :VOCAB].set(nrm(next(keys), (HIDDEN, VOCAB)))
    p["out_w"] = out_w.astype(jnp.bfloat16)
    p["out_b"] = jnp.zeros((1, VOCAB_PAD), jnp.float32)
    return p


# ------------------------------------ forward pass -----------------------------------------
def generate_model_forward(params, src, seg):
    B, S = src.shape
    # only trivial int index prep stays in XLA; all activations live inside the single kernel
    src_flat = src.reshape(B * S, 1).astype(jnp.int32)
    seg_flat = seg.reshape(B * S, 1).astype(jnp.int32)

    prob_flat = pl.pallas_call(
        _generate_model_kernel,
        out_shape=jax.ShapeDtypeStruct((B * S, VOCAB_PAD), jnp.float32),
        # no grid: single invocation, all (tiny) arrays fully VMEM-resident, no pipeline steps
    )(src_flat, seg_flat, seg.astype(jnp.int32),
      params["word_emb"], params["pos_emb"], params["seg_emb"],
      params["emb_ln_g"], params["emb_ln_b"],
      params["w_qkv"], params["b_qkv"], params["w_o"], params["b_o"],
      params["ln1_g"], params["ln1_b"], params["w1"], params["b1"],
      params["w2"], params["b2"], params["ln2_g"], params["ln2_b"],
      params["out_w"], params["out_b"])

    # un-pad the lane-dense head and restore [B, S, VOCAB]
    return prob_flat[:, :VOCAB].reshape(B, S, VOCAB)


# ---------------------------------------- main ----------------------------------------------
if __name__ == "__main__":
    key = jax.random.PRNGKey(0)
    k_param, k_src = jax.random.split(key)

    params = init_params(k_param)
    src = jax.random.randint(k_src, (BATCH, SEQ), 1, VOCAB, dtype=jnp.int32)
    seg = jnp.ones((BATCH, SEQ), dtype=jnp.int32)
    seg = seg.at[1, -2:].set(0)          # a couple of padding positions to exercise the mask

    prob = jax.jit(generate_model_forward)(params, src, seg)
    prob = jax.block_until_ready(prob)

    assert prob.shape == (BATCH, SEQ, VOCAB)
    assert bool(jnp.all(jnp.isfinite(prob)))
    row_sums = jnp.sum(prob, axis=-1)
    assert bool(jnp.all(jnp.abs(row_sums - 1.0) < 1e-3))
    print("KERNEL_OK")
</pallas_src>

<mosaic_0001>
module attributes {stable_mosaic.version = 11 : i64} {
  func.func @_generate_model_kernel(%arg0: memref<16x1xi32, #tpu.memory_space<vmem>>, %arg1: memref<16x1xi32, #tpu.memory_space<vmem>>, %arg2: memref<2x8xi32, #tpu.memory_space<vmem>>, %arg3: memref<64x32xf32, #tpu.memory_space<vmem>>, %arg4: memref<8x32xf32, #tpu.memory_space<vmem>>, %arg5: memref<8x32xf32, #tpu.memory_space<vmem>>, %arg6: memref<1x32xf32, #tpu.memory_space<vmem>>, %arg7: memref<1x32xf32, #tpu.memory_space<vmem>>, %arg8: memref<2x32x96xbf16, #tpu.memory_space<vmem>>, %arg9: memref<2x1x96xf32, #tpu.memory_space<vmem>>, %arg10: memref<2x32x32xbf16, #tpu.memory_space<vmem>>, %arg11: memref<2x1x32xf32, #tpu.memory_space<vmem>>, %arg12: memref<2x1x32xf32, #tpu.memory_space<vmem>>, %arg13: memref<2x1x32xf32, #tpu.memory_space<vmem>>, %arg14: memref<2x32x64xbf16, #tpu.memory_space<vmem>>, %arg15: memref<2x1x64xf32, #tpu.memory_space<vmem>>, %arg16: memref<2x64x32xbf16, #tpu.memory_space<vmem>>, %arg17: memref<2x1x32xf32, #tpu.memory_space<vmem>>, %arg18: memref<2x1x32xf32, #tpu.memory_space<vmem>>, %arg19: memref<2x1x32xf32, #tpu.memory_space<vmem>>, %arg20: memref<32x128xbf16, #tpu.memory_space<vmem>>, %arg21: memref<1x128xf32, #tpu.memory_space<vmem>>, %arg22: memref<16x128xf32, #tpu.memory_space<vmem>>) attributes {dimension_semantics = [], scalar_prefetch = 0 : i64, scratch_operands = 0 : i64, tpu.core_type = #tpu.core_type<tc>} {
    %c0 = arith.constant 0 : index
    %c0_0 = arith.constant 0 : index
    %0 = vector.load %arg0[%c0, %c0_0] : memref<16x1xi32, #tpu.memory_space<vmem>>, vector<16x1xi32>
    %c0_1 = arith.constant 0 : index
    %c0_2 = arith.constant 0 : index
    %1 = vector.load %arg1[%c0_1, %c0_2] : memref<16x1xi32, #tpu.memory_space<vmem>>, vector<16x1xi32>
    %2 = tpu.iota {dimensions = array<i32: 1>} : vector<16x64xi32>
    %3 = vector.broadcast %0 : vector<16x1xi32> to vector<16x64xi32>
    %4 = arith.cmpi eq, %3, %2 : vector<16x64xi32>
    %5 = arith.extui %4 : vector<16x64xi1> to vector<16x64xi32>
    %6 = arith.sitofp %5 : vector<16x64xi32> to vector<16x64xf32>
    %7 = tpu.iota {dimensions = array<i32: 1>} : vector<16x8xi32>
    %8 = vector.broadcast %1 : vector<16x1xi32> to vector<16x8xi32>
    %9 = arith.cmpi eq, %8, %7 : vector<16x8xi32>
    %10 = arith.extui %9 : vector<16x8xi1> to vector<16x8xi32>
    %11 = arith.sitofp %10 : vector<16x8xi32> to vector<16x8xf32>
    %c0_3 = arith.constant 0 : index
    %c0_4 = arith.constant 0 : index
    %12 = vector.load %arg3[%c0_3, %c0_4] : memref<64x32xf32, #tpu.memory_space<vmem>>, vector<64x32xf32>
    %cst = arith.constant dense<0.000000e+00> : vector<16x32xf32>
    %13 = tpu.matmul %6, %12, %cst {dimension_numbers = #tpu.dot_dimension_numbers<[1], [0], [0], [1], [0, 0, 1, 1], [], []>} : vector<16x64xf32>, vector<64x32xf32>, vector<16x32xf32> -> vector<16x32xf32>
    %c0_5 = arith.constant 0 : index
    %c0_6 = arith.constant 0 : index
    %14 = vector.load %arg5[%c0_5, %c0_6] : memref<8x32xf32, #tpu.memory_space<vmem>>, vector<8x32xf32>
    %cst_7 = arith.constant dense<0.000000e+00> : vector<16x32xf32>
    %15 = tpu.matmul %11, %14, %cst_7 {dimension_numbers = #tpu.dot_dimension_numbers<[1], [0], [0], [1], [0, 0, 1, 1], [], []>} : vector<16x8xf32>, vector<8x32xf32>, vector<16x32xf32> -> vector<16x32xf32>
    %16 = arith.addf %13, %15 : vector<16x32xf32>
    %c0_8 = arith.constant 0 : index
    %c0_9 = arith.constant 0 : index
    %17 = vector.load %arg4[%c0_8, %c0_9] : memref<8x32xf32, #tpu.memory_space<vmem>>, vector<8x32xf32>
    %18 = tpu.concatenate %17, %17 in 0 : vector<8x32xf32>, vector<8x32xf32> -> vector<16x32xf32>
    %19 = arith.addf %16, %18 : vector<16x32xf32>
    %c0_10 = arith.constant 0 : index
    %c0_11 = arith.constant 0 : index
    %20 = vector.load %arg6[%c0_10, %c0_11] : memref<1x32xf32, #tpu.memory_space<vmem>>, vector<1x32xf32>
    %c0_12 = arith.constant 0 : index
    %c0_13 = arith.constant 0 : index
    %21 = vector.load %arg7[%c0_12, %c0_13] : memref<1x32xf32, #tpu.memory_space<vmem>>, vector<1x32xf32>
    %cst_14 = arith.constant dense<0.000000e+00> : vector<16xf32>
    %22 = vector.multi_reduction <add>, %19, %cst_14 [1] : vector<16x32xf32> to vector<16xf32>
    %23 = vector.shape_cast %22 : vector<16xf32> to vector<16x1xf32>
    %cst_15 = arith.constant 3.200000e+01 : f32
    %24 = vector.broadcast %cst_15 : f32 to vector<16x1xf32>
    %25 = arith.divf %23, %24 : vector<16x1xf32>
    %26 = vector.broadcast %25 : vector<16x1xf32> to vector<16x32xf32>
    %27 = arith.subf %19, %26 : vector<16x32xf32>
    %28 = arith.mulf %27, %27 : vector<16x32xf32>
    %cst_16 = arith.constant dense<0.000000e+00> : vector<16xf32>
    %29 = vector.multi_reduction <add>, %28, %cst_16 [1] : vector<16x32xf32> to vector<16xf32>
    %30 = vector.shape_cast %29 : vector<16xf32> to vector<16x1xf32>
    %cst_17 = arith.constant 3.200000e+01 : f32
    %31 = vector.broadcast %cst_17 : f32 to vector<16x1xf32>
    %32 = arith.divf %30, %31 : vector<16x1xf32>
    %cst_18 = arith.constant 9.99999997E-7 : f32
    %33 = vector.broadcast %cst_18 : f32 to vector<16x1xf32>
    %34 = arith.addf %32, %33 : vector<16x1xf32>
    %35 = math.rsqrt %34 : vector<16x1xf32>
    %36 = vector.broadcast %35 : vector<16x1xf32> to vector<16x32xf32>
    %37 = arith.mulf %27, %36 : vector<16x32xf32>
    %38 = vector.broadcast %20 : vector<1x32xf32> to vector<16x32xf32>
    %39 = arith.mulf %37, %38 : vector<16x32xf32>
    %40 = vector.broadcast %21 : vector<1x32xf32> to vector<16x32xf32>
    %41 = arith.addf %39, %40 : vector<16x32xf32>
    %c0_19 = arith.constant 0 : index
    %c0_20 = arith.constant 0 : index
    %42 = vector.load %arg2[%c0_19, %c0_20] : memref<2x8xi32, #tpu.memory_space<vmem>>, vector<2x8xi32>
    %43 = vector.extract_strided_slice %42 {offsets = [0, 0], sizes = [1, 8], strides = [1, 1]} : vector<2x8xi32> to vector<1x8xi32>
    %c0_i32 = arith.constant 0 : i32
    %44 = vector.broadcast %c0_i32 : i32 to vector<1x8xi32>
    %45 = arith.cmpi sgt, %43, %44 : vector<1x8xi32>
    %cst_21 = arith.constant 0.000000e+00 : f32
    %cst_22 = arith.constant -1.000000e+04 : f32
    %46 = vector.broadcast %cst_21 : f32 to vector<1x8xf32>
    %47 = vector.broadcast %cst_22 : f32 to vector<1x8xf32>
    %48 = arith.select %45, %46, %47 : vector<1x8xi1>, vector<1x8xf32>
    %49 = vector.extract_strided_slice %42 {offsets = [1, 0], sizes = [1, 8], strides = [1, 1]} : vector<2x8xi32> to vector<1x8xi32>
    %c0_i32_23 = arith.constant 0 : i32
    %50 = vector.broadcast %c0_i32_23 : i32 to vector<1x8xi32>
    %51 = arith.cmpi sgt, %49, %50 : vector<1x8xi32>
    %cst_24 = arith.constant 0.000000e+00 : f32
    %cst_25 = arith.constant -1.000000e+04 : f32
    %52 = vector.broadcast %cst_24 : f32 to vector<1x8xf32>
    %53 = vector.broadcast %cst_25 : f32 to vector<1x8xf32>
    %54 = arith.select %51, %52, %53 : vector<1x8xi1>, vector<1x8xf32>
    %55 = arith.truncf %41 : vector<16x32xf32> to vector<16x32xbf16>
    %c0_26 = arith.constant 0 : index
    %c0_27 = arith.constant 0 : index
    %c0_28 = arith.constant 0 : index
    %56 = vector.load %arg8[%c0_26, %c0_27, %c0_28] : memref<2x32x96xbf16, #tpu.memory_space<vmem>>, vector<1x32x96xbf16>
    %57 = vector.shape_cast %56 : vector<1x32x96xbf16> to vector<32x96xbf16>
    %cst_29 = arith.constant dense<0.000000e+00> : vector<16x96xf32>
    %58 = tpu.matmul %55, %57, %cst_29 {dimension_numbers = #tpu.dot_dimension_numbers<[1], [0], [0], [1], [0, 0, 1, 1], [], []>} : vector<16x32xbf16>, vector<32x96xbf16>, vector<16x96xf32> -> vector<16x96xf32>
    %c0_30 = arith.constant 0 : index
    %c0_31 = arith.constant 0 : index
    %c0_32 = arith.constant 0 : index
    %59 = vector.load %arg9[%c0_30, %c0_31, %c0_32] : memref<2x1x96xf32, #tpu.memory_space<vmem>>, vector<1x1x96xf32>
    %60 = vector.shape_cast %59 : vector<1x1x96xf32> to vector<1x96xf32>
    %61 = vector.broadcast %60 : vector<1x96xf32> to vector<16x96xf32>
    %62 = arith.addf %58, %61 : vector<16x96xf32>
    %c0_33 = arith.constant 0 : index
    %c0_34 = arith.constant 0 : index
    %c0_35 = arith.constant 0 : index
    %63 = vector.load %arg10[%c0_33, %c0_34, %c0_35] : memref<2x32x32xbf16, #tpu.memory_space<vmem>>, vector<1x32x32xbf16>
    %64 = vector.shape_cast %63 : vector<1x32x32xbf16> to vector<32x32xbf16>
    %65 = vector.extract_strided_slice %62 {offsets = [0, 0], sizes = [8, 96], strides = [1, 1]} : vector<16x96xf32> to vector<8x96xf32>
    %66 = vector.extract_strided_slice %65 {offsets = [0, 0], sizes = [8, 16], strides = [1, 1]} : vector<8x96xf32> to vector<8x16xf32>
    %67 = vector.extract_strided_slice %65 {offsets = [0, 32], sizes = [8, 16], strides = [1, 1]} : vector<8x96xf32> to vector<8x16xf32>
    %68 = vector.extract_strided_slice %65 {offsets = [0, 64], sizes = [8, 16], strides = [1, 1]} : vector<8x96xf32> to vector<8x16xf32>
    %cst_36 = arith.constant dense<0.000000e+00> : vector<8x8xf32>
    %69 = tpu.matmul %66, %67, %cst_36 {dimension_numbers = #tpu.dot_dimension_numbers<[1], [1], [0], [0], [0, 0, 1, 0], [], []>} : vector<8x16xf32>, vector<8x16xf32>, vector<8x8xf32> -> vector<8x8xf32>
    %cst_37 = arith.constant 2.500000e-01 : f32
    %70 = vector.broadcast %cst_37 : f32 to vector<8x8xf32>
    %71 = arith.mulf %69, %70 : vector<8x8xf32>
    %72 = vector.broadcast %48 : vector<1x8xf32> to vector<8x8xf32>
    %73 = arith.addf %71, %72 : vector<8x8xf32>
    %cst_38 = arith.constant dense<0xFF800000> : vector<8xf32>
    %74 = vector.multi_reduction <maximumf>, %73, %cst_38 [1] : vector<8x8xf32> to vector<8xf32>
    %75 = vector.shape_cast %74 : vector<8xf32> to vector<8x1xf32>
    %76 = vector.broadcast %75 : vector<8x1xf32> to vector<8x8xf32>
    %77 = arith.subf %73, %76 : vector<8x8xf32>
    %78 = math.exp %77 : vector<8x8xf32>
    %cst_39 = arith.constant dense<0.000000e+00> : vector<8xf32>
    %79 = vector.multi_reduction <add>, %78, %cst_39 [1] : vector<8x8xf32> to vector<8xf32>
    %80 = vector.shape_cast %79 : vector<8xf32> to vector<8x1xf32>
    %81 = tpu.reciprocal %80 {approx = true} : vector<8x1xf32> -> vector<8x1xf32>
    %82 = vector.broadcast %81 : vector<8x1xf32> to vector<8x8xf32>
    %83 = arith.mulf %78, %82 : vector<8x8xf32>
    %cst_40 = arith.constant dense<0.000000e+00> : vector<8x16xf32>
    %84 = tpu.matmul %83, %68, %cst_40 {dimension_numbers = #tpu.dot_dimension_numbers<[1], [0], [0], [1], [0, 0, 1, 1], [], []>} : vector<8x8xf32>, vector<8x16xf32>, vector<8x16xf32> -> vector<8x16xf32>
    %85 = arith.truncf %84 : vector<8x16xf32> to vector<8x16xbf16>
    %86 = vector.extract_strided_slice %64 {offsets = [0, 0], sizes = [16, 32], strides = [1, 1]} : vector<32x32xbf16> to vector<16x32xbf16>
    %cst_41 = arith.constant dense<0.000000e+00> : vector<8x32xf32>
    %87 = tpu.matmul %85, %86, %cst_41 {dimension_numbers = #tpu.dot_dimension_numbers<[1], [0], [0], [1], [0, 0, 1, 1], [], []>} : vector<8x16xbf16>, vector<16x32xbf16>, vector<8x32xf32> -> vector<8x32xf32>
    %88 = vector.extract_strided_slice %65 {offsets = [0, 16], sizes = [8, 16], strides = [1, 1]} : vector<8x96xf32> to vector<8x16xf32>
    %89 = vector.extract_strided_slice %65 {offsets = [0, 48], sizes = [8, 16], strides = [1, 1]} : vector<8x96xf32> to vector<8x16xf32>
    %90 = vector.extract_strided_slice %65 {offsets = [0, 80], sizes = [8, 16], strides = [1, 1]} : vector<8x96xf32> to vector<8x16xf32>
    %cst_42 = arith.constant dense<0.000000e+00> : vector<8x8xf32>
    %91 = tpu.matmul %88, %89, %cst_42 {dimension_numbers = #tpu.dot_dimension_numbers<[1], [1], [0], [0], [0, 0, 1, 0], [], []>} : vector<8x16xf32>, vector<8x16xf32>, vector<8x8xf32> -> vector<8x8xf32>
    %cst_43 = arith.constant 2.500000e-01 : f32
    %92 = vector.broadcast %cst_43 : f32 to vector<8x8xf32>
    %93 = arith.mulf %91, %92 : vector<8x8xf32>
    %94 = vector.broadcast %48 : vector<1x8xf32> to vector<8x8xf32>
    %95 = arith.addf %93, %94 : vector<8x8xf32>
    %cst_44 = arith.constant dense<0xFF800000> : vector<8xf32>
    %96 = vector.multi_reduction <maximumf>, %95, %cst_44 [1] : vector<8x8xf32> to vector<8xf32>
    %97 = vector.shape_cast %96 : vector<8xf32> to vector<8x1xf32>
    %98 = vector.broadcast %97 : vector<8x1xf32> to vector<8x8xf32>
    %99 = arith.subf %95, %98 : vector<8x8xf32>
    %100 = math.exp %99 : vector<8x8xf32>
    %cst_45 = arith.constant dense<0.000000e+00> : vector<8xf32>
    %101 = vector.multi_reduction <add>, %100, %cst_45 [1] : vector<8x8xf32> to vector<8xf32>
    %102 = vector.shape_cast %101 : vector<8xf32> to vector<8x1xf32>
    %103 = tpu.reciprocal %102 {approx = true} : vector<8x1xf32> -> vector<8x1xf32>
    %104 = vector.broadcast %103 : vector<8x1xf32> to vector<8x8xf32>
    %105 = arith.mulf %100, %104 : vector<8x8xf32>
    %cst_46 = arith.constant dense<0.000000e+00> : vector<8x16xf32>
    %106 = tpu.matmul %105, %90, %cst_46 {dimension_numbers = #tpu.dot_dimension_numbers<[1], [0], [0], [1], [0, 0, 1, 1], [], []>} : vector<8x8xf32>, vector<8x16xf32>, vector<8x16xf32> -> vector<8x16xf32>
    %107 = arith.truncf %106 : vector<8x16xf32> to vector<8x16xbf16>
    %108 = vector.extract_strided_slice %64 {offsets = [16, 0], sizes = [16, 32], strides = [1, 1]} : vector<32x32xbf16> to vector<16x32xbf16>
    %cst_47 = arith.constant dense<0.000000e+00> : vector<8x32xf32>
    %109 = tpu.matmul %107, %108, %cst_47 {dimension_numbers = #tpu.dot_dimension_numbers<[1], [0], [0], [1], [0, 0, 1, 1], [], []>} : vector<8x16xbf16>, vector<16x32xbf16>, vector<8x32xf32> -> vector<8x32xf32>
    %110 = arith.addf %87, %109 : vector<8x32xf32>
    %111 = vector.extract_strided_slice %62 {offsets = [8, 0], sizes = [8, 96], strides = [1, 1]} : vector<16x96xf32> to vector<8x96xf32>
    %112 = vector.extract_strided_slice %111 {offsets = [0, 0], sizes = [8, 16], strides = [1, 1]} : vector<8x96xf32> to vector<8x16xf32>
    %113 = vector.extract_strided_slice %111 {offsets = [0, 32], sizes = [8, 16], strides = [1, 1]} : vector<8x96xf32> to vector<8x16xf32>
    %114 = vector.extract_strided_slice %111 {offsets = [0, 64], sizes = [8, 16], strides = [1, 1]} : vector<8x96xf32> to vector<8x16xf32>
    %cst_48 = arith.constant dense<0.000000e+00> : vector<8x8xf32>
    %115 = tpu.matmul %112, %113, %cst_48 {dimension_numbers = #tpu.dot_dimension_numbers<[1], [1], [0], [0], [0, 0, 1, 0], [], []>} : vector<8x16xf32>, vector<8x16xf32>, vector<8x8xf32> -> vector<8x8xf32>
    %cst_49 = arith.constant 2.500000e-01 : f32
    %116 = vector.broadcast %cst_49 : f32 to vector<8x8xf32>
    %117 = arith.mulf %115, %116 : vector<8x8xf32>
    %118 = vector.broadcast %54 : vector<1x8xf32> to vector<8x8xf32>
    %119 = arith.addf %117, %118 : vector<8x8xf32>
    %cst_50 = arith.constant dense<0xFF800000> : vector<8xf32>
    %120 = vector.multi_reduction <maximumf>, %119, %cst_50 [1] : vector<8x8xf32> to vector<8xf32>
    %121 = vector.shape_cast %120 : vector<8xf32> to vector<8x1xf32>
    %122 = vector.broadcast %121 : vector<8x1xf32> to vector<8x8xf32>
    %123 = arith.subf %119, %122 : vector<8x8xf32>
    %124 = math.exp %123 : vector<8x8xf32>
    %cst_51 = arith.constant dense<0.000000e+00> : vector<8xf32>
    %125 = vector.multi_reduction <add>, %124, %cst_51 [1] : vector<8x8xf32> to vector<8xf32>
    %126 = vector.shape_cast %125 : vector<8xf32> to vector<8x1xf32>
    %127 = tpu.reciprocal %126 {approx = true} : vector<8x1xf32> -> vector<8x1xf32>
    %128 = vector.broadcast %127 : vector<8x1xf32> to vector<8x8xf32>
    %129 = arith.mulf %124, %128 : vector<8x8xf32>
    %cst_52 = arith.constant dense<0.000000e+00> : vector<8x16xf32>
    %130 = tpu.matmul %129, %114, %cst_52 {dimension_numbers = #tpu.dot_dimension_numbers<[1], [0], [0], [1], [0, 0, 1, 1], [], []>} : vector<8x8xf32>, vector<8x16xf32>, vector<8x16xf32> -> vector<8x16xf32>
    %131 = arith.truncf %130 : vector<8x16xf32> to vector<8x16xbf16>
    %132 = vector.extract_strided_slice %64 {offsets = [0, 0], sizes = [16, 32], strides = [1, 1]} : vector<32x32xbf16> to vector<16x32xbf16>
    %cst_53 = arith.constant dense<0.000000e+00> : vector<8x32xf32>
    %133 = tpu.matmul %131, %132, %cst_53 {dimension_numbers = #tpu.dot_dimension_numbers<[1], [0], [0], [1], [0, 0, 1, 1], [], []>} : vector<8x16xbf16>, vector<16x32xbf16>, vector<8x32xf32> -> vector<8x32xf32>
    %134 = vector.extract_strided_slice %111 {offsets = [0, 16], sizes = [8, 16], strides = [1, 1]} : vector<8x96xf32> to vector<8x16xf32>
    %135 = vector.extract_strided_slice %111 {offsets = [0, 48], sizes = [8, 16], strides = [1, 1]} : vector<8x96xf32> to vector<8x16xf32>
    %136 = vector.extract_strided_slice %111 {offsets = [0, 80], sizes = [8, 16], strides = [1, 1]} : vector<8x96xf32> to vector<8x16xf32>
    %cst_54 = arith.constant dense<0.000000e+00> : vector<8x8xf32>
    %137 = tpu.matmul %134, %135, %cst_54 {dimension_numbers = #tpu.dot_dimension_numbers<[1], [1], [0], [0], [0, 0, 1, 0], [], []>} : vector<8x16xf32>, vector<8x16xf32>, vector<8x8xf32> -> vector<8x8xf32>
    %cst_55 = arith.constant 2.500000e-01 : f32
    %138 = vector.broadcast %cst_55 : f32 to vector<8x8xf32>
    %139 = arith.mulf %137, %138 : vector<8x8xf32>
    %140 = vector.broadcast %54 : vector<1x8xf32> to vector<8x8xf32>
    %141 = arith.addf %139, %140 : vector<8x8xf32>
    %cst_56 = arith.constant dense<0xFF800000> : vector<8xf32>
    %142 = vector.multi_reduction <maximumf>, %141, %cst_56 [1] : vector<8x8xf32> to vector<8xf32>
    %143 = vector.shape_cast %142 : vector<8xf32> to vector<8x1xf32>
    %144 = vector.broadcast %143 : vector<8x1xf32> to vector<8x8xf32>
    %145 = arith.subf %141, %144 : vector<8x8xf32>
    %146 = math.exp %145 : vector<8x8xf32>
    %cst_57 = arith.constant dense<0.000000e+00> : vector<8xf32>
    %147 = vector.multi_reduction <add>, %146, %cst_57 [1] : vector<8x8xf32> to vector<8xf32>
    %148 = vector.shape_cast %147 : vector<8xf32> to vector<8x1xf32>
    %149 = tpu.reciprocal %148 {approx = true} : vector<8x1xf32> -> vector<8x1xf32>
    %150 = vector.broadcast %149 : vector<8x1xf32> to vector<8x8xf32>
    %151 = arith.mulf %146, %150 : vector<8x8xf32>
    %cst_58 = arith.constant dense<0.000000e+00> : vector<8x16xf32>
    %152 = tpu.matmul %151, %136, %cst_58 {dimension_numbers = #tpu.dot_dimension_numbers<[1], [0], [0], [1], [0, 0, 1, 1], [], []>} : vector<8x8xf32>, vector<8x16xf32>, vector<8x16xf32> -> vector<8x16xf32>
    %153 = arith.truncf %152 : vector<8x16xf32> to vector<8x16xbf16>
    %154 = vector.extract_strided_slice %64 {offsets = [16, 0], sizes = [16, 32], strides = [1, 1]} : vector<32x32xbf16> to vector<16x32xbf16>
    %cst_59 = arith.constant dense<0.000000e+00> : vector<8x32xf32>
    %155 = tpu.matmul %153, %154, %cst_59 {dimension_numbers = #tpu.dot_dimension_numbers<[1], [0], [0], [1], [0, 0, 1, 1], [], []>} : vector<8x16xbf16>, vector<16x32xbf16>, vector<8x32xf32> -> vector<8x32xf32>
    %156 = arith.addf %133, %155 : vector<8x32xf32>
    %157 = tpu.concatenate %110, %156 in 0 : vector<8x32xf32>, vector<8x32xf32> -> vector<16x32xf32>
    %c0_60 = arith.constant 0 : index
    %c0_61 = arith.constant 0 : index
    %c0_62 = arith.constant 0 : index
    %158 = vector.load %arg11[%c0_60, %c0_61, %c0_62] : memref<2x1x32xf32, #tpu.memory_space<vmem>>, vector<1x1x32xf32>
    %159 = vector.shape_cast %158 : vector<1x1x32xf32> to vector<1x32xf32>
    %160 = vector.broadcast %159 : vector<1x32xf32> to vector<16x32xf32>
    %161 = arith.addf %157, %160 : vector<16x32xf32>
    %162 = arith.addf %161, %41 : vector<16x32xf32>
    %c0_63 = arith.constant 0 : index
    %c0_64 = arith.constant 0 : index
    %c0_65 = arith.constant 0 : index
    %163 = vector.load %arg12[%c0_63, %c0_64, %c0_65] : memref<2x1x32xf32, #tpu.memory_space<vmem>>, vector<1x1x32xf32>
    %164 = vector.shape_cast %163 : vector<1x1x32xf32> to vector<1x32xf32>
    %c0_66 = arith.constant 0 : index
    %c0_67 = arith.constant 0 : index
    %c0_68 = arith.constant 0 : index
    %165 = vector.load %arg13[%c0_66, %c0_67, %c0_68] : memref<2x1x32xf32, #tpu.memory_space<vmem>>, vector<1x1x32xf32>
    %166 = vector.shape_cast %165 : vector<1x1x32xf32> to vector<1x32xf32>
    %cst_69 = arith.constant dense<0.000000e+00> : vector<16xf32>
    %167 = vector.multi_reduction <add>, %162, %cst_69 [1] : vector<16x32xf32> to vector<16xf32>
    %168 = vector.shape_cast %167 : vector<16xf32> to vector<16x1xf32>
    %cst_70 = arith.constant 3.200000e+01 : f32
    %169 = vector.broadcast %cst_70 : f32 to vector<16x1xf32>
    %170 = arith.divf %168, %169 : vector<16x1xf32>
    %171 = vector.broadcast %170 : vector<16x1xf32> to vector<16x32xf32>
    %172 = arith.subf %162, %171 : vector<16x32xf32>
    %173 = arith.mulf %172, %172 : vector<16x32xf32>
    %cst_71 = arith.constant dense<0.000000e+00> : vector<16xf32>
    %174 = vector.multi_reduction <add>, %173, %cst_71 [1] : vector<16x32xf32> to vector<16xf32>
    %175 = vector.shape_cast %174 : vector<16xf32> to vector<16x1xf32>
    %cst_72 = arith.constant 3.200000e+01 : f32
    %176 = vector.broadcast %cst_72 : f32 to vector<16x1xf32>
    %177 = arith.divf %175, %176 : vector<16x1xf32>
    %cst_73 = arith.constant 9.99999997E-7 : f32
    %178 = vector.broadcast %cst_73 : f32 to vector<16x1xf32>
    %179 = arith.addf %177, %178 : vector<16x1xf32>
    %180 = math.rsqrt %179 : vector<16x1xf32>
    %181 = vector.broadcast %180 : vector<16x1xf32> to vector<16x32xf32>
    %182 = arith.mulf %172, %181 : vector<16x32xf32>
    %183 = vector.broadcast %164 : vector<1x32xf32> to vector<16x32xf32>
    %184 = arith.mulf %182, %183 : vector<16x32xf32>
    %185 = vector.broadcast %166 : vector<1x32xf32> to vector<16x32xf32>
    %186 = arith.addf %184, %185 : vector<16x32xf32>
    %187 = arith.truncf %186 : vector<16x32xf32> to vector<16x32xbf16>
    %c0_74 = arith.constant 0 : index
    %c0_75 = arith.constant 0 : index
    %c0_76 = arith.constant 0 : index
    %188 = vector.load %arg14[%c0_74, %c0_75, %c0_76] : memref<2x32x64xbf16, #tpu.memory_space<vmem>>, vector<1x32x64xbf16>
    %189 = vector.shape_cast %188 : vector<1x32x64xbf16> to vector<32x64xbf16>
    %cst_77 = arith.constant dense<0.000000e+00> : vector<16x64xf32>
    %190 = tpu.matmul %187, %189, %cst_77 {dimension_numbers = #tpu.dot_dimension_numbers<[1], [0], [0], [1], [0, 0, 1, 1], [], []>} : vector<16x32xbf16>, vector<32x64xbf16>, vector<16x64xf32> -> vector<16x64xf32>
    %c0_78 = arith.constant 0 : index
    %c0_79 = arith.constant 0 : index
    %c0_80 = arith.constant 0 : index
    %191 = vector.load %arg15[%c0_78, %c0_79, %c0_80] : memref<2x1x64xf32, #tpu.memory_space<vmem>>, vector<1x1x64xf32>
    %192 = vector.shape_cast %191 : vector<1x1x64xf32> to vector<1x64xf32>
    %193 = vector.broadcast %192 : vector<1x64xf32> to vector<16x64xf32>
    %194 = arith.addf %190, %193 : vector<16x64xf32>
    %cst_81 = arith.constant 5.000000e-01 : f32
    %195 = vector.broadcast %cst_81 : f32 to vector<16x64xf32>
    %196 = arith.mulf %195, %194 : vector<16x64xf32>
    %cst_82 = arith.constant 4.471500e-02 : f32
    %197 = vector.broadcast %cst_82 : f32 to vector<16x64xf32>
    %198 = arith.mulf %197, %194 : vector<16x64xf32>
    %199 = arith.mulf %198, %194 : vector<16x64xf32>
    %200 = arith.mulf %199, %194 : vector<16x64xf32>
    %201 = arith.addf %194, %200 : vector<16x64xf32>
    %cst_83 = arith.constant 0.797884583 : f32
    %202 = vector.broadcast %cst_83 : f32 to vector<16x64xf32>
    %203 = arith.mulf %202, %201 : vector<16x64xf32>
    %204 = math.tanh %203 : vector<16x64xf32>
    %cst_84 = arith.constant 1.000000e+00 : f32
    %205 = vector.broadcast %cst_84 : f32 to vector<16x64xf32>
    %206 = arith.addf %205, %204 : vector<16x64xf32>
    %207 = arith.mulf %196, %206 : vector<16x64xf32>
    %208 = arith.truncf %207 : vector<16x64xf32> to vector<16x64xbf16>
    %c0_85 = arith.constant 0 : index
    %c0_86 = arith.constant 0 : index
    %c0_87 = arith.constant 0 : index
    %209 = vector.load %arg16[%c0_85, %c0_86, %c0_87] : memref<2x64x32xbf16, #tpu.memory_space<vmem>>, vector<1x64x32xbf16>
    %210 = vector.shape_cast %209 : vector<1x64x32xbf16> to vector<64x32xbf16>
    %cst_88 = arith.constant dense<0.000000e+00> : vector<16x32xf32>
    %211 = tpu.matmul %208, %210, %cst_88 {dimension_numbers = #tpu.dot_dimension_numbers<[1], [0], [0], [1], [0, 0, 1, 1], [], []>} : vector<16x64xbf16>, vector<64x32xbf16>, vector<16x32xf32> -> vector<16x32xf32>
    %c0_89 = arith.constant 0 : index
    %c0_90 = arith.constant 0 : index
    %c0_91 = arith.constant 0 : index
    %212 = vector.load %arg17[%c0_89, %c0_90, %c0_91] : memref<2x1x32xf32, #tpu.memory_space<vmem>>, vector<1x1x32xf32>
    %213 = vector.shape_cast %212 : vector<1x1x32xf32> to vector<1x32xf32>
    %214 = vector.broadcast %213 : vector<1x32xf32> to vector<16x32xf32>
    %215 = arith.addf %211, %214 : vector<16x32xf32>
    %216 = arith.addf %215, %186 : vector<16x32xf32>
    %c0_92 = arith.constant 0 : index
    %c0_93 = arith.constant 0 : index
    %c0_94 = arith.constant 0 : index
    %217 = vector.load %arg18[%c0_92, %c0_93, %c0_94] : memref<2x1x32xf32, #tpu.memory_space<vmem>>, vector<1x1x32xf32>
    %218 = vector.shape_cast %217 : vector<1x1x32xf32> to vector<1x32xf32>
    %c0_95 = arith.constant 0 : index
    %c0_96 = arith.constant 0 : index
    %c0_97 = arith.constant 0 : index
    %219 = vector.load %arg19[%c0_95, %c0_96, %c0_97] : memref<2x1x32xf32, #tpu.memory_space<vmem>>, vector<1x1x32xf32>
    %220 = vector.shape_cast %219 : vector<1x1x32xf32> to vector<1x32xf32>
    %cst_98 = arith.constant dense<0.000000e+00> : vector<16xf32>
    %221 = vector.multi_reduction <add>, %216, %cst_98 [1] : vector<16x32xf32> to vector<16xf32>
    %222 = vector.shape_cast %221 : vector<16xf32> to vector<16x1xf32>
    %cst_99 = arith.constant 3.200000e+01 : f32
    %223 = vector.broadcast %cst_99 : f32 to vector<16x1xf32>
    %224 = arith.divf %222, %223 : vector<16x1xf32>
    %225 = vector.broadcast %224 : vector<16x1xf32> to vector<16x32xf32>
    %226 = arith.subf %216, %225 : vector<16x32xf32>
    %227 = arith.mulf %226, %226 : vector<16x32xf32>
    %cst_100 = arith.constant dense<0.000000e+00> : vector<16xf32>
    %228 = vector.multi_reduction <add>, %227, %cst_100 [1] : vector<16x32xf32> to vector<16xf32>
    %229 = vector.shape_cast %228 : vector<16xf32> to vector<16x1xf32>
    %cst_101 = arith.constant 3.200000e+01 : f32
    %230 = vector.broadcast %cst_101 : f32 to vector<16x1xf32>
    %231 = arith.divf %229, %230 : vector<16x1xf32>
    %cst_102 = arith.constant 9.99999997E-7 : f32
    %232 = vector.broadcast %cst_102 : f32 to vector<16x1xf32>
    %233 = arith.addf %231, %232 : vector<16x1xf32>
    %234 = math.rsqrt %233 : vector<16x1xf32>
    %235 = vector.broadcast %234 : vector<16x1xf32> to vector<16x32xf32>
    %236 = arith.mulf %226, %235 : vector<16x32xf32>
    %237 = vector.broadcast %218 : vector<1x32xf32> to vector<16x32xf32>
    %238 = arith.mulf %236, %237 : vector<16x32xf32>
    %239 = vector.broadcast %220 : vector<1x32xf32> to vector<16x32xf32>
    %240 = arith.addf %238, %239 : vector<16x32xf32>
    %241 = arith.truncf %240 : vector<16x32xf32> to vector<16x32xbf16>
    %c1 = arith.constant 1 : index
    %c0_103 = arith.constant 0 : index
    %c0_104 = arith.constant 0 : index
    %242 = vector.load %arg8[%c1, %c0_103, %c0_104] : memref<2x32x96xbf16, #tpu.memory_space<vmem>>, vector<1x32x96xbf16>
    %243 = vector.shape_cast %242 : vector<1x32x96xbf16> to vector<32x96xbf16>
    %cst_105 = arith.constant dense<0.000000e+00> : vector<16x96xf32>
    %244 = tpu.matmul %241, %243, %cst_105 {dimension_numbers = #tpu.dot_dimension_numbers<[1], [0], [0], [1], [0, 0, 1, 1], [], []>} : vector<16x32xbf16>, vector<32x96xbf16>, vector<16x96xf32> -> vector<16x96xf32>
    %c1_106 = arith.constant 1 : index
    %c0_107 = arith.constant 0 : index
    %c0_108 = arith.constant 0 : index
    %245 = vector.load %arg9[%c1_106, %c0_107, %c0_108] : memref<2x1x96xf32, #tpu.memory_space<vmem>>, vector<1x1x96xf32>
    %246 = vector.shape_cast %245 : vector<1x1x96xf32> to vector<1x96xf32>
    %247 = vector.broadcast %246 : vector<1x96xf32> to vector<16x96xf32>
    %248 = arith.addf %244, %247 : vector<16x96xf32>
    %c1_109 = arith.constant 1 : index
    %c0_110 = arith.constant 0 : index
    %c0_111 = arith.constant 0 : index
    %249 = vector.load %arg10[%c1_109, %c0_110, %c0_111] : memref<2x32x32xbf16, #tpu.memory_space<vmem>>, vector<1x32x32xbf16>
    %250 = vector.shape_cast %249 : vector<1x32x32xbf16> to vector<32x32xbf16>
    %251 = vector.extract_strided_slice %248 {offsets = [0, 0], sizes = [8, 96], strides = [1, 1]} : vector<16x96xf32> to vector<8x96xf32>
    %252 = vector.extract_strided_slice %251 {offsets = [0, 0], sizes = [8, 16], strides = [1, 1]} : vector<8x96xf32> to vector<8x16xf32>
    %253 = vector.extract_strided_slice %251 {offsets = [0, 32], sizes = [8, 16], strides = [1, 1]} : vector<8x96xf32> to vector<8x16xf32>
    %254 = vector.extract_strided_slice %251 {offsets = [0, 64], sizes = [8, 16], strides = [1, 1]} : vector<8x96xf32> to vector<8x16xf32>
    %cst_112 = arith.constant dense<0.000000e+00> : vector<8x8xf32>
    %255 = tpu.matmul %252, %253, %cst_112 {dimension_numbers = #tpu.dot_dimension_numbers<[1], [1], [0], [0], [0, 0, 1, 0], [], []>} : vector<8x16xf32>, vector<8x16xf32>, vector<8x8xf32> -> vector<8x8xf32>
    %cst_113 = arith.constant 2.500000e-01 : f32
    %256 = vector.broadcast %cst_113 : f32 to vector<8x8xf32>
    %257 = arith.mulf %255, %256 : vector<8x8xf32>
    %258 = vector.broadcast %48 : vector<1x8xf32> to vector<8x8xf32>
    %259 = arith.addf %257, %258 : vector<8x8xf32>
    %cst_114 = arith.constant dense<0xFF800000> : vector<8xf32>
    %260 = vector.multi_reduction <maximumf>, %259, %cst_114 [1] : vector<8x8xf32> to vector<8xf32>
    %261 = vector.shape_cast %260 : vector<8xf32> to vector<8x1xf32>
    %262 = vector.broadcast %261 : vector<8x1xf32> to vector<8x8xf32>
    %263 = arith.subf %259, %262 : vector<8x8xf32>
    %264 = math.exp %263 : vector<8x8xf32>
    %cst_115 = arith.constant dense<0.000000e+00> : vector<8xf32>
    %265 = vector.multi_reduction <add>, %264, %cst_115 [1] : vector<8x8xf32> to vector<8xf32>
    %266 = vector.shape_cast %265 : vector<8xf32> to vector<8x1xf32>
    %267 = tpu.reciprocal %266 {approx = true} : vector<8x1xf32> -> vector<8x1xf32>
    %268 = vector.broadcast %267 : vector<8x1xf32> to vector<8x8xf32>
    %269 = arith.mulf %264, %268 : vector<8x8xf32>
    %cst_116 = arith.constant dense<0.000000e+00> : vector<8x16xf32>
    %270 = tpu.matmul %269, %254, %cst_116 {dimension_numbers = #tpu.dot_dimension_numbers<[1], [0], [0], [1], [0, 0, 1, 1], [], []>} : vector<8x8xf32>, vector<8x16xf32>, vector<8x16xf32> -> vector<8x16xf32>
    %271 = arith.truncf %270 : vector<8x16xf32> to vector<8x16xbf16>
    %272 = vector.extract_strided_slice %250 {offsets = [0, 0], sizes = [16, 32], strides = [1, 1]} : vector<32x32xbf16> to vector<16x32xbf16>
    %cst_117 = arith.constant dense<0.000000e+00> : vector<8x32xf32>
    %273 = tpu.matmul %271, %272, %cst_117 {dimension_numbers = #tpu.dot_dimension_numbers<[1], [0], [0], [1], [0, 0, 1, 1], [], []>} : vector<8x16xbf16>, vector<16x32xbf16>, vector<8x32xf32> -> vector<8x32xf32>
    %274 = vector.extract_strided_slice %251 {offsets = [0, 16], sizes = [8, 16], strides = [1, 1]} : vector<8x96xf32> to vector<8x16xf32>
    %275 = vector.extract_strided_slice %251 {offsets = [0, 48], sizes = [8, 16], strides = [1, 1]} : vector<8x96xf32> to vector<8x16xf32>
    %276 = vector.extract_strided_slice %251 {offsets = [0, 80], sizes = [8, 16], strides = [1, 1]} : vector<8x96xf32> to vector<8x16xf32>
    %cst_118 = arith.constant dense<0.000000e+00> : vector<8x8xf32>
    %277 = tpu.matmul %274, %275, %cst_118 {dimension_numbers = #tpu.dot_dimension_numbers<[1], [1], [0], [0], [0, 0, 1, 0], [], []>} : vector<8x16xf32>, vector<8x16xf32>, vector<8x8xf32> -> vector<8x8xf32>
    %cst_119 = arith.constant 2.500000e-01 : f32
    %278 = vector.broadcast %cst_119 : f32 to vector<8x8xf32>
    %279 = arith.mulf %277, %278 : vector<8x8xf32>
    %280 = vector.broadcast %48 : vector<1x8xf32> to vector<8x8xf32>
    %281 = arith.addf %279, %280 : vector<8x8xf32>
    %cst_120 = arith.constant dense<0xFF800000> : vector<8xf32>
    %282 = vector.multi_reduction <maximumf>, %281, %cst_120 [1] : vector<8x8xf32> to vector<8xf32>
    %283 = vector.shape_cast %282 : vector<8xf32> to vector<8x1xf32>
    %284 = vector.broadcast %283 : vector<8x1xf32> to vector<8x8xf32>
    %285 = arith.subf %281, %284 : vector<8x8xf32>
    %286 = math.exp %285 : vector<8x8xf32>
    %cst_121 = arith.constant dense<0.000000e+00> : vector<8xf32>
    %287 = vector.multi_reduction <add>, %286, %cst_121 [1] : vector<8x8xf32> to vector<8xf32>
    %288 = vector.shape_cast %287 : vector<8xf32> to vector<8x1xf32>
    %289 = tpu.reciprocal %288 {approx = true} : vector<8x1xf32> -> vector<8x1xf32>
    %290 = vector.broadcast %289 : vector<8x1xf32> to vector<8x8xf32>
    %291 = arith.mulf %286, %290 : vector<8x8xf32>
    %cst_122 = arith.constant dense<0.000000e+00> : vector<8x16xf32>
    %292 = tpu.matmul %291, %276, %cst_122 {dimension_numbers = #tpu.dot_dimension_numbers<[1], [0], [0], [1], [0, 0, 1, 1], [], []>} : vector<8x8xf32>, vector<8x16xf32>, vector<8x16xf32> -> vector<8x16xf32>
    %293 = arith.truncf %292 : vector<8x16xf32> to vector<8x16xbf16>
    %294 = vector.extract_strided_slice %250 {offsets = [16, 0], sizes = [16, 32], strides = [1, 1]} : vector<32x32xbf16> to vector<16x32xbf16>
    %cst_123 = arith.constant dense<0.000000e+00> : vector<8x32xf32>
    %295 = tpu.matmul %293, %294, %cst_123 {dimension_numbers = #tpu.dot_dimension_numbers<[1], [0], [0], [1], [0, 0, 1, 1], [], []>} : vector<8x16xbf16>, vector<16x32xbf16>, vector<8x32xf32> -> vector<8x32xf32>
    %296 = arith.addf %273, %295 : vector<8x32xf32>
    %297 = vector.extract_strided_slice %248 {offsets = [8, 0], sizes = [8, 96], strides = [1, 1]} : vector<16x96xf32> to vector<8x96xf32>
    %298 = vector.extract_strided_slice %297 {offsets = [0, 0], sizes = [8, 16], strides = [1, 1]} : vector<8x96xf32> to vector<8x16xf32>
    %299 = vector.extract_strided_slice %297 {offsets = [0, 32], sizes = [8, 16], strides = [1, 1]} : vector<8x96xf32> to vector<8x16xf32>
    %300 = vector.extract_strided_slice %297 {offsets = [0, 64], sizes = [8, 16], strides = [1, 1]} : vector<8x96xf32> to vector<8x16xf32>
    %cst_124 = arith.constant dense<0.000000e+00> : vector<8x8xf32>
    %301 = tpu.matmul %298, %299, %cst_124 {dimension_numbers = #tpu.dot_dimension_numbers<[1], [1], [0], [0], [0, 0, 1, 0], [], []>} : vector<8x16xf32>, vector<8x16xf32>, vector<8x8xf32> -> vector<8x8xf32>
    %cst_125 = arith.constant 2.500000e-01 : f32
    %302 = vector.broadcast %cst_125 : f32 to vector<8x8xf32>
    %303 = arith.mulf %301, %302 : vector<8x8xf32>
    %304 = vector.broadcast %54 : vector<1x8xf32> to vector<8x8xf32>
    %305 = arith.addf %303, %304 : vector<8x8xf32>
    %cst_126 = arith.constant dense<0xFF800000> : vector<8xf32>
    %306 = vector.multi_reduction <maximumf>, %305, %cst_126 [1] : vector<8x8xf32> to vector<8xf32>
    %307 = vector.shape_cast %306 : vector<8xf32> to vector<8x1xf32>
    %308 = vector.broadcast %307 : vector<8x1xf32> to vector<8x8xf32>
    %309 = arith.subf %305, %308 : vector<8x8xf32>
    %310 = math.exp %309 : vector<8x8xf32>
    %cst_127 = arith.constant dense<0.000000e+00> : vector<8xf32>
    %311 = vector.multi_reduction <add>, %310, %cst_127 [1] : vector<8x8xf32> to vector<8xf32>
    %312 = vector.shape_cast %311 : vector<8xf32> to vector<8x1xf32>
    %313 = tpu.reciprocal %312 {approx = true} : vector<8x1xf32> -> vector<8x1xf32>
    %314 = vector.broadcast %313 : vector<8x1xf32> to vector<8x8xf32>
    %315 = arith.mulf %310, %314 : vector<8x8xf32>
    %cst_128 = arith.constant dense<0.000000e+00> : vector<8x16xf32>
    %316 = tpu.matmul %315, %300, %cst_128 {dimension_numbers = #tpu.dot_dimension_numbers<[1], [0], [0], [1], [0, 0, 1, 1], [], []>} : vector<8x8xf32>, vector<8x16xf32>, vector<8x16xf32> -> vector<8x16xf32>
    %317 = arith.truncf %316 : vector<8x16xf32> to vector<8x16xbf16>
    %318 = vector.extract_strided_slice %250 {offsets = [0, 0], sizes = [16, 32], strides = [1, 1]} : vector<32x32xbf16> to vector<16x32xbf16>
    %cst_129 = arith.constant dense<0.000000e+00> : vector<8x32xf32>
    %319 = tpu.matmul %317, %318, %cst_129 {dimension_numbers = #tpu.dot_dimension_numbers<[1], [0], [0], [1], [0, 0, 1, 1], [], []>} : vector<8x16xbf16>, vector<16x32xbf16>, vector<8x32xf32> -> vector<8x32xf32>
    %320 = vector.extract_strided_slice %297 {offsets = [0, 16], sizes = [8, 16], strides = [1, 1]} : vector<8x96xf32> to vector<8x16xf32>
    %321 = vector.extract_strided_slice %297 {offsets = [0, 48], sizes = [8, 16], strides = [1, 1]} : vector<8x96xf32> to vector<8x16xf32>
    %322 = vector.extract_strided_slice %297 {offsets = [0, 80], sizes = [8, 16], strides = [1, 1]} : vector<8x96xf32> to vector<8x16xf32>
    %cst_130 = arith.constant dense<0.000000e+00> : vector<8x8xf32>
    %323 = tpu.matmul %320, %321, %cst_130 {dimension_numbers = #tpu.dot_dimension_numbers<[1], [1], [0], [0], [0, 0, 1, 0], [], []>} : vector<8x16xf32>, vector<8x16xf32>, vector<8x8xf32> -> vector<8x8xf32>
    %cst_131 = arith.constant 2.500000e-01 : f32
    %324 = vector.broadcast %cst_131 : f32 to vector<8x8xf32>
    %325 = arith.mulf %323, %324 : vector<8x8xf32>
    %326 = vector.broadcast %54 : vector<1x8xf32> to vector<8x8xf32>
    %327 = arith.addf %325, %326 : vector<8x8xf32>
    %cst_132 = arith.constant dense<0xFF800000> : vector<8xf32>
    %328 = vector.multi_reduction <maximumf>, %327, %cst_132 [1] : vector<8x8xf32> to vector<8xf32>
    %329 = vector.shape_cast %328 : vector<8xf32> to vector<8x1xf32>
    %330 = vector.broadcast %329 : vector<8x1xf32> to vector<8x8xf32>
    %331 = arith.subf %327, %330 : vector<8x8xf32>
    %332 = math.exp %331 : vector<8x8xf32>
    %cst_133 = arith.constant dense<0.000000e+00> : vector<8xf32>
    %333 = vector.multi_reduction <add>, %332, %cst_133 [1] : vector<8x8xf32> to vector<8xf32>
    %334 = vector.shape_cast %333 : vector<8xf32> to vector<8x1xf32>
    %335 = tpu.reciprocal %334 {approx = true} : vector<8x1xf32> -> vector<8x1xf32>
    %336 = vector.broadcast %335 : vector<8x1xf32> to vector<8x8xf32>
    %337 = arith.mulf %332, %336 : vector<8x8xf32>
    %cst_134 = arith.constant dense<0.000000e+00> : vector<8x16xf32>
    %338 = tpu.matmul %337, %322, %cst_134 {dimension_numbers = #tpu.dot_dimension_numbers<[1], [0], [0], [1], [0, 0, 1, 1], [], []>} : vector<8x8xf32>, vector<8x16xf32>, vector<8x16xf32> -> vector<8x16xf32>
    %339 = arith.truncf %338 : vector<8x16xf32> to vector<8x16xbf16>
    %340 = vector.extract_strided_slice %250 {offsets = [16, 0], sizes = [16, 32], strides = [1, 1]} : vector<32x32xbf16> to vector<16x32xbf16>
    %cst_135 = arith.constant dense<0.000000e+00> : vector<8x32xf32>
    %341 = tpu.matmul %339, %340, %cst_135 {dimension_numbers = #tpu.dot_dimension_numbers<[1], [0], [0], [1], [0, 0, 1, 1], [], []>} : vector<8x16xbf16>, vector<16x32xbf16>, vector<8x32xf32> -> vector<8x32xf32>
    %342 = arith.addf %319, %341 : vector<8x32xf32>
    %343 = tpu.concatenate %296, %342 in 0 : vector<8x32xf32>, vector<8x32xf32> -> vector<16x32xf32>
    %c1_136 = arith.constant 1 : index
    %c0_137 = arith.constant 0 : index
    %c0_138 = arith.constant 0 : index
    %344 = vector.load %arg11[%c1_136, %c0_137, %c0_138] : memref<2x1x32xf32, #tpu.memory_space<vmem>>, vector<1x1x32xf32>
    %345 = vector.shape_cast %344 : vector<1x1x32xf32> to vector<1x32xf32>
    %346 = vector.broadcast %345 : vector<1x32xf32> to vector<16x32xf32>
    %347 = arith.addf %343, %346 : vector<16x32xf32>
    %348 = arith.addf %347, %240 : vector<16x32xf32>
    %c1_139 = arith.constant 1 : index
    %c0_140 = arith.constant 0 : index
    %c0_141 = arith.constant 0 : index
    %349 = vector.load %arg12[%c1_139, %c0_140, %c0_141] : memref<2x1x32xf32, #tpu.memory_space<vmem>>, vector<1x1x32xf32>
    %350 = vector.shape_cast %349 : vector<1x1x32xf32> to vector<1x32xf32>
    %c1_142 = arith.constant 1 : index
    %c0_143 = arith.constant 0 : index
    %c0_144 = arith.constant 0 : index
    %351 = vector.load %arg13[%c1_142, %c0_143, %c0_144] : memref<2x1x32xf32, #tpu.memory_space<vmem>>, vector<1x1x32xf32>
    %352 = vector.shape_cast %351 : vector<1x1x32xf32> to vector<1x32xf32>
    %cst_145 = arith.constant dense<0.000000e+00> : vector<16xf32>
    %353 = vector.multi_reduction <add>, %348, %cst_145 [1] : vector<16x32xf32> to vector<16xf32>
    %354 = vector.shape_cast %353 : vector<16xf32> to vector<16x1xf32>
    %cst_146 = arith.constant 3.200000e+01 : f32
    %355 = vector.broadcast %cst_146 : f32 to vector<16x1xf32>
    %356 = arith.divf %354, %355 : vector<16x1xf32>
    %357 = vector.broadcast %356 : vector<16x1xf32> to vector<16x32xf32>
    %358 = arith.subf %348, %357 : vector<16x32xf32>
    %359 = arith.mulf %358, %358 : vector<16x32xf32>
    %cst_147 = arith.constant dense<0.000000e+00> : vector<16xf32>
    %360 = vector.multi_reduction <add>, %359, %cst_147 [1] : vector<16x32xf32> to vector<16xf32>
    %361 = vector.shape_cast %360 : vector<16xf32> to vector<16x1xf32>
    %cst_148 = arith.constant 3.200000e+01 : f32
    %362 = vector.broadcast %cst_148 : f32 to vector<16x1xf32>
    %363 = arith.divf %361, %362 : vector<16x1xf32>
    %cst_149 = arith.constant 9.99999997E-7 : f32
    %364 = vector.broadcast %cst_149 : f32 to vector<16x1xf32>
    %365 = arith.addf %363, %364 : vector<16x1xf32>
    %366 = math.rsqrt %365 : vector<16x1xf32>
    %367 = vector.broadcast %366 : vector<16x1xf32> to vector<16x32xf32>
    %368 = arith.mulf %358, %367 : vector<16x32xf32>
    %369 = vector.broadcast %350 : vector<1x32xf32> to vector<16x32xf32>
    %370 = arith.mulf %368, %369 : vector<16x32xf32>
    %371 = vector.broadcast %352 : vector<1x32xf32> to vector<16x32xf32>
    %372 = arith.addf %370, %371 : vector<16x32xf32>
    %373 = arith.truncf %372 : vector<16x32xf32> to vector<16x32xbf16>
    %c1_150 = arith.constant 1 : index
    %c0_151 = arith.constant 0 : index
    %c0_152 = arith.constant 0 : index
    %374 = vector.load %arg14[%c1_150, %c0_151, %c0_152] : memref<2x32x64xbf16, #tpu.memory_space<vmem>>, vector<1x32x64xbf16>
    %375 = vector.shape_cast %374 : vector<1x32x64xbf16> to vector<32x64xbf16>
    %cst_153 = arith.constant dense<0.000000e+00> : vector<16x64xf32>
    %376 = tpu.matmul %373, %375, %cst_153 {dimension_numbers = #tpu.dot_dimension_numbers<[1], [0], [0], [1], [0, 0, 1, 1], [], []>} : vector<16x32xbf16>, vector<32x64xbf16>, vector<16x64xf32> -> vector<16x64xf32>
    %c1_154 = arith.constant 1 : index
    %c0_155 = arith.constant 0 : index
    %c0_156 = arith.constant 0 : index
    %377 = vector.load %arg15[%c1_154, %c0_155, %c0_156] : memref<2x1x64xf32, #tpu.memory_space<vmem>>, vector<1x1x64xf32>
    %378 = vector.shape_cast %377 : vector<1x1x64xf32> to vector<1x64xf32>
    %379 = vector.broadcast %378 : vector<1x64xf32> to vector<16x64xf32>
    %380 = arith.addf %376, %379 : vector<16x64xf32>
    %cst_157 = arith.constant 5.000000e-01 : f32
    %381 = vector.broadcast %cst_157 : f32 to vector<16x64xf32>
    %382 = arith.mulf %381, %380 : vector<16x64xf32>
    %cst_158 = arith.constant 4.471500e-02 : f32
    %383 = vector.broadcast %cst_158 : f32 to vector<16x64xf32>
    %384 = arith.mulf %383, %380 : vector<16x64xf32>
    %385 = arith.mulf %384, %380 : vector<16x64xf32>
    %386 = arith.mulf %385, %380 : vector<16x64xf32>
    %387 = arith.addf %380, %386 : vector<16x64xf32>
    %cst_159 = arith.constant 0.797884583 : f32
    %388 = vector.broadcast %cst_159 : f32 to vector<16x64xf32>
    %389 = arith.mulf %388, %387 : vector<16x64xf32>
    %390 = math.tanh %389 : vector<16x64xf32>
    %cst_160 = arith.constant 1.000000e+00 : f32
    %391 = vector.broadcast %cst_160 : f32 to vector<16x64xf32>
    %392 = arith.addf %391, %390 : vector<16x64xf32>
    %393 = arith.mulf %382, %392 : vector<16x64xf32>
    %394 = arith.truncf %393 : vector<16x64xf32> to vector<16x64xbf16>
    %c1_161 = arith.constant 1 : index
    %c0_162 = arith.constant 0 : index
    %c0_163 = arith.constant 0 : index
    %395 = vector.load %arg16[%c1_161, %c0_162, %c0_163] : memref<2x64x32xbf16, #tpu.memory_space<vmem>>, vector<1x64x32xbf16>
    %396 = vector.shape_cast %395 : vector<1x64x32xbf16> to vector<64x32xbf16>
    %cst_164 = arith.constant dense<0.000000e+00> : vector<16x32xf32>
    %397 = tpu.matmul %394, %396, %cst_164 {dimension_numbers = #tpu.dot_dimension_numbers<[1], [0], [0], [1], [0, 0, 1, 1], [], []>} : vector<16x64xbf16>, vector<64x32xbf16>, vector<16x32xf32> -> vector<16x32xf32>
    %c1_165 = arith.constant 1 : index
    %c0_166 = arith.constant 0 : index
    %c0_167 = arith.constant 0 : index
    %398 = vector.load %arg17[%c1_165, %c0_166, %c0_167] : memref<2x1x32xf32, #tpu.memory_space<vmem>>, vector<1x1x32xf32>
    %399 = vector.shape_cast %398 : vector<1x1x32xf32> to vector<1x32xf32>
    %400 = vector.broadcast %399 : vector<1x32xf32> to vector<16x32xf32>
    %401 = arith.addf %397, %400 : vector<16x32xf32>
    %402 = arith.addf %401, %372 : vector<16x32xf32>
    %c1_168 = arith.constant 1 : index
    %c0_169 = arith.constant 0 : index
    %c0_170 = arith.constant 0 : index
    %403 = vector.load %arg18[%c1_168, %c0_169, %c0_170] : memref<2x1x32xf32, #tpu.memory_space<vmem>>, vector<1x1x32xf32>
    %404 = vector.shape_cast %403 : vector<1x1x32xf32> to vector<1x32xf32>
    %c1_171 = arith.constant 1 : index
    %c0_172 = arith.constant 0 : index
    %c0_173 = arith.constant 0 : index
    %405 = vector.load %arg19[%c1_171, %c0_172, %c0_173] : memref<2x1x32xf32, #tpu.memory_space<vmem>>, vector<1x1x32xf32>
    %406 = vector.shape_cast %405 : vector<1x1x32xf32> to vector<1x32xf32>
    %cst_174 = arith.constant dense<0.000000e+00> : vector<16xf32>
    %407 = vector.multi_reduction <add>, %402, %cst_174 [1] : vector<16x32xf32> to vector<16xf32>
    %408 = vector.shape_cast %407 : vector<16xf32> to vector<16x1xf32>
    %cst_175 = arith.constant 3.200000e+01 : f32
    %409 = vector.broadcast %cst_175 : f32 to vector<16x1xf32>
    %410 = arith.divf %408, %409 : vector<16x1xf32>
    %411 = vector.broadcast %410 : vector<16x1xf32> to vector<16x32xf32>
    %412 = arith.subf %402, %411 : vector<16x32xf32>
    %413 = arith.mulf %412, %412 : vector<16x32xf32>
    %cst_176 = arith.constant dense<0.000000e+00> : vector<16xf32>
    %414 = vector.multi_reduction <add>, %413, %cst_176 [1] : vector<16x32xf32> to vector<16xf32>
    %415 = vector.shape_cast %414 : vector<16xf32> to vector<16x1xf32>
    %cst_177 = arith.constant 3.200000e+01 : f32
    %416 = vector.broadcast %cst_177 : f32 to vector<16x1xf32>
    %417 = arith.divf %415, %416 : vector<16x1xf32>
    %cst_178 = arith.constant 9.99999997E-7 : f32
    %418 = vector.broadcast %cst_178 : f32 to vector<16x1xf32>
    %419 = arith.addf %417, %418 : vector<16x1xf32>
    %420 = math.rsqrt %419 : vector<16x1xf32>
    %421 = vector.broadcast %420 : vector<16x1xf32> to vector<16x32xf32>
    %422 = arith.mulf %412, %421 : vector<16x32xf32>
    %423 = vector.broadcast %404 : vector<1x32xf32> to vector<16x32xf32>
    %424 = arith.mulf %422, %423 : vector<16x32xf32>
    %425 = vector.broadcast %406 : vector<1x32xf32> to vector<16x32xf32>
    %426 = arith.addf %424, %425 : vector<16x32xf32>
    %427 = arith.truncf %426 : vector<16x32xf32> to vector<16x32xbf16>
    %c0_179 = arith.constant 0 : index
    %c0_180 = arith.constant 0 : index
    %428 = vector.load %arg20[%c0_179, %c0_180] : memref<32x128xbf16, #tpu.memory_space<vmem>>, vector<32x128xbf16>
    %cst_181 = arith.constant dense<0.000000e+00> : vector<16x128xf32>
    %429 = tpu.matmul %427, %428, %cst_181 {dimension_numbers = #tpu.dot_dimension_numbers<[1], [0], [0], [1], [0, 0, 1, 1], [], []>} : vector<16x32xbf16>, vector<32x128xbf16>, vector<16x128xf32> -> vector<16x128xf32>
    %c0_182 = arith.constant 0 : index
    %c0_183 = arith.constant 0 : index
    %430 = vector.load %arg21[%c0_182, %c0_183] : memref<1x128xf32, #tpu.memory_space<vmem>>, vector<1x128xf32>
    %431 = vector.broadcast %430 : vector<1x128xf32> to vector<16x128xf32>
    %432 = arith.addf %429, %431 : vector<16x128xf32>
    %cst_184 = arith.constant 5.000000e-01 : f32
    %433 = vector.broadcast %cst_184 : f32 to vector<16x128xf32>
    %434 = arith.mulf %433, %432 : vector<16x128xf32>
    %cst_185 = arith.constant 4.471500e-02 : f32
    %435 = vector.broadcast %cst_185 : f32 to vector<16x128xf32>
    %436 = arith.mulf %435, %432 : vector<16x128xf32>
    %437 = arith.mulf %436, %432 : vector<16x128xf32>
    %438 = arith.mulf %437, %432 : vector<16x128xf32>
    %439 = arith.addf %432, %438 : vector<16x128xf32>
    %cst_186 = arith.constant 0.797884583 : f32
    %440 = vector.broadcast %cst_186 : f32 to vector<16x128xf32>
    %441 = arith.mulf %440, %439 : vector<16x128xf32>
    %442 = math.tanh %441 : vector<16x128xf32>
    %cst_187 = arith.constant 1.000000e+00 : f32
    %443 = vector.broadcast %cst_187 : f32 to vector<16x128xf32>
    %444 = arith.addf %443, %442 : vector<16x128xf32>
    %445 = arith.mulf %434, %444 : vector<16x128xf32>
    %446 = tpu.iota {dimensions = array<i32: 1>} : vector<16x128xi32>
    %c64_i32 = arith.constant 64 : i32
    %447 = vector.broadcast %c64_i32 : i32 to vector<16x128xi32>
    %448 = arith.cmpi slt, %446, %447 : vector<16x128xi32>
    %cst_188 = arith.constant -1.000000e+30 : f32
    %449 = vector.broadcast %cst_188 : f32 to vector<16x128xf32>
    %450 = arith.select %448, %445, %449 : vector<16x128xi1>, vector<16x128xf32>
    %cst_189 = arith.constant dense<0xFF800000> : vector<16xf32>
    %451 = vector.multi_reduction <maximumf>, %450, %cst_189 [1] : vector<16x128xf32> to vector<16xf32>
    %452 = vector.shape_cast %451 : vector<16xf32> to vector<16x1xf32>
    %453 = vector.broadcast %452 : vector<16x1xf32> to vector<16x128xf32>
    %454 = arith.subf %450, %453 : vector<16x128xf32>
    %455 = math.exp %454 : vector<16x128xf32>
    %cst_190 = arith.constant dense<0.000000e+00> : vector<16xf32>
    %456 = vector.multi_reduction <add>, %455, %cst_190 [1] : vector<16x128xf32> to vector<16xf32>
    %457 = vector.shape_cast %456 : vector<16xf32> to vector<16x1xf32>
    %458 = tpu.reciprocal %457 : vector<16x1xf32> -> vector<16x1xf32>
    %459 = vector.broadcast %458 : vector<16x1xf32> to vector<16x128xf32>
    %460 = arith.mulf %455, %459 : vector<16x128xf32>
    %c0_191 = arith.constant 0 : index
    %c0_192 = arith.constant 0 : index
    %461 = vector.load %arg22[%c0_191, %c0_192] : memref<16x128xf32, #tpu.memory_space<vmem>>, vector<16x128xf32>
    tpu.vector_store %arg22[%c0_191, %c0_192], %460 {strides = array<i32>} : memref<16x128xf32, #tpu.memory_space<vmem>>, vector<16x128xf32>,
    return
  }
}

</mosaic_0001>

<bundles_post_ra>
// kernel: generate_model_forward.1
= control target key start
LH: loop header
LB: loop body
LE: loop exit
PB: predicated region body
PF: predicated region fallthrough
CT: control target
= control target key end

     0   :  { %v3396_v0 = vmov 0   ;;  %v3397_v5 = vmov 0.0   ;;  %v76_v10 = vlaneseq  ;;  %vm111_vm0 = vcmask 64512   ;;  %s3400_s28 = smov 96   ;;  %s3401_s30 = smov 112   ;;  %s3988_s1 = inlined_call_operand.vmem [shape: s32[16,1], index: 1, kind: input, shape index: {}]   ;;  %s3989_s0 = inlined_call_operand.vmem [shape: s32[16,1], index: 0, kind: input, shape index: {}]   ;;  %s3990_s5 = inlined_call_operand.vmem [shape: f32[8,32], index: 5, kind: input, shape index: {}]   ;;  %s3991_s3 = inlined_call_operand.vmem [shape: f32[64,32], index: 3, kind: input, shape index: {}]   ;;  %s3992_s4 = inlined_call_operand.vmem [shape: f32[8,32], index: 4, kind: input, shape index: {}]   ;;  %s3993_s8 = inlined_call_operand.vmem [shape: bf16[2,32,96], index: 8, kind: input, shape index: {}]   ;;  %s3994_s6 = inlined_call_operand.vmem [shape: f32[1,32], index: 6, kind: input, shape index: {}]   ;;  %s3995_s7 = inlined_call_operand.vmem [shape: f32[1,32], index: 7, kind: input, shape index: {}]   ;;  %s3996_s9 = inlined_call_operand.vmem [shape: f32[2,1,96], index: 9, kind: input, shape index: {}]   ;;  %s3997_s2 = inlined_call_operand.vmem [shape: s32[2,8], index: 2, kind: input, shape index: {}]   ;;  %s3998_s10 = inlined_call_operand.vmem [shape: bf16[2,32,32], index: 10, kind: input, shape index: {}]   ;;  %s3999_s11 = inlined_call_operand.vmem [shape: f32[2,1,32], index: 11, kind: input, shape index: {}]   ;;  %s4000_s14 = inlined_call_operand.vmem [shape: bf16[2,32,64], index: 14, kind: input, shape index: {}]   ;;  %s4001_s12 = inlined_call_operand.vmem [shape: f32[2,1,32], index: 12, kind: input, shape index: {}]   ;;  %s4002_s13 = inlined_call_operand.vmem [shape: f32[2,1,32], index: 13, kind: input, shape index: {}]   ;;  %s4003_s16 = inlined_call_operand.vmem [shape: bf16[2,64,32], index: 16, kind: input, shape index: {}]   ;;  %s4004_s15 = inlined_call_operand.vmem [shape: f32[2,1,64], index: 15, kind: input, shape index: {}]   ;;  %s4005_s17 = inlined_call_operand.vmem [shape: f32[2,1,32], index: 17, kind: input, shape index: {}]   ;;  %s4006_s18 = inlined_call_operand.vmem [shape: f32[2,1,32], index: 18, kind: input, shape index: {}]   ;;  %s4007_s19 = inlined_call_operand.vmem [shape: f32[2,1,32], index: 19, kind: input, shape index: {}]   ;;  %s4008_s20 = inlined_call_operand.vmem [shape: bf16[32,128], index: 20, kind: input, shape index: {}]   ;;  %s4009_s21 = inlined_call_operand.vmem [shape: f32[1,128], index: 21, kind: input, shape index: {}]   ;;  %s4010_s22 = inlined_call_operand.vmem [shape: f32[16,128], index: 22, kind: output, shape index: {}]  }
   0x1   :  { %4015 = sst [smem:[#allocation2_spill]] %s3988_s1  ;;  %3300 = vset.pattern.permute.xlu0 %v3396_v0  ;;  %3301 = vset.pattern.permute.xlu1 %v3396_v0  ;;  %vm193_vm4 = vcmask 523264   ;;  %vm280_vm6 = vcmask 261120   ;;  %vm3398_vm7 = vmmov 0   ;;  %v2864_v60 = vld [vmem:[%s3995_s7] ss:$0 sm:$0xff] }
   0x2   :  { %4016 = sst [smem:[#allocation3_spill]] %s3989_s0  ;;  %s4022_s29 = sld [smem:[#allocation2_spill]]  ;;  %3081 = vmatprep.subr.bf16.mxu1 %v3397_v5  ;;  %v3543_v11 = vand.u32 127, %v76_v10  ;;  %3085 = vmatprep.mubr.msk.bf16.mxu1 %vm3398_vm7, %v3397_v5  ;;  %vm402_vm8 = vcmask 130048  }
   0x3   :  { %4017 = sst [smem:[#allocation4_spill]] %s3990_s5  ;;  %s4023_s1 = sld [smem:[#allocation3_spill]] }
   0x4   :  { %4018 = sst [smem:[#allocation5_spill]] %s3991_s3  ;;  %s4024_s26 = sld [smem:[#allocation4_spill]]  ;;  %vm2828_vm10 = vcmp.lt.s32.totalorder %v3543_v11, 64 }
   0x5   :  { %4019 = sst [smem:[#allocation6_spill]] %s3992_s4  ;;  %s4025_s3 = sld [smem:[#allocation5_spill]] }
   0x6   :  { %4020 = sst [smem:[#allocation7_spill]] %s3993_s8  ;;  %s3399_s7 = smov 80  }
   0x7   :  { %4021 = sst [smem:[#allocation8_spill]] %s3994_s6  ;;  %s3404_s4 = smov 64  }
   0x8   :  { %v74_v1 = vld [vmem:[%s4022_s29] sm:$0xff]  ;;  %v75_v3 = vld [vmem:[%s4022_s29 + $0x8] sm:$0xff]  ;;  %s4026_s29 = sld [smem:[#allocation6_spill]]  ;;  %s4028_s6 = sld [smem:[#allocation8_spill]] }
   0x9   :  { %v72_v2 = vld [vmem:[%s4023_s1] sm:$0xff]  ;;  %91 = vperm.xlu0 %3300, %v74_v1   ;;  %v73_v4 = vld [vmem:[%s4023_s1 + $0x8] sm:$0xff]  ;;  %s4027_s1 = sld [smem:[#allocation7_spill]] }
   0xa   :  { %79 = vperm.xlu1 %3301, %v72_v2   ;;  %v110_v6 = vld [vmem:[%s4024_s26] sm:$0xff] }
   0xb   :  { %v102_v7 = vld [vmem:[%s4025_s3] sm:$0xff]  ;;  %v103_v8 = vld [vmem:[%s4025_s3 + $0x8] sm:$0xff]  ;;  %3057 = vmatprep.subr.mxu0 %v110_v6  ;;  %v104_v15 = vld [vmem:[%s4025_s3 + $0x10] sm:$0xff] }
   0xc   :  { %v3273_v9 = vpack.c.bf16 %v103_v8, %v102_v7  ;;  %3058 = vmatpush3.msra.mxu0 %v110_v6  ;;  %v105_v16 = vld [vmem:[%s4025_s3 + $0x18] sm:$0xff]  ;;  %v106_v21 = vld [vmem:[%s4025_s3 + $0x20] sm:$0xff]  ;;  %v107_v22 = vld [vmem:[%s4025_s3 + $0x28] sm:$0xff] }
   0xd   :  { %94 = vperm.xlu0 %3300, %v75_v3   ;;  %v3277_v18 = vpack.c.bf16 %v105_v16, %v104_v15  ;;  %v3281_v23 = vpack.c.bf16 %v107_v22, %v106_v21  ;;  %v108_v24 = vld [vmem:[%s4025_s3 + $0x30] sm:$0xff]  ;;  %v109_v25 = vld [vmem:[%s4025_s3 + $0x38] sm:$0xff]  ;;  %v2865_v1 = vld [vmem:[%s3996_s9] ss:$0 sm:$0xff]  ;;  %v3632_v15 = vshrl.u32 %v76_v10, 7 }
   0xe   :  { %82 = vperm.xlu1 %3301, %v73_v4   ;;  %3274 = vmatprep.subr.bf16.mxu0 %v3273_v9  ;;  %v3285_v26 = vpack.c.bf16 %v109_v25, %v108_v24  ;;  %v275_v29 = vld [vmem:[%s4026_s29] sm:$0xff] }
   0xf   :  { %v3302_v46 = vld [vmem:[%s4027_s1] sm:$0xff]   ;;  %v3303_v47 = vld [vmem:[%s4027_s1 + $0x8] sm:$0xff]   ;;  %v480_v16 = vsub.s32 0, %v3632_v15 }
  0x10   :  { %3082 = vmatpush3.bf16.msra.mxu1 %v3302_v46  ;;  %v2863_v56 = vld [vmem:[%s4028_s6] ss:$0 sm:$0xff] }
  0x11   :  { %3083 = vmatprep.subr.bf16.mxu1 %v3397_v5 }
  0x14   :  { %3084 = vmatpush3.bf16.msra.mxu1 %v3303_v47 }
  0x15   :  { %3089 = vmatprep.subr.mxu1 %v3397_v5 }
  0x88   :  { %v92_v12 = vpop.permute.xlu0 %91 }
  0x89   :  { %vm96_vm1 = vcmp.eq.s32.totalorder %v92_v12, %v3543_v11  ;;  %v80_v13 = vpop.permute.xlu1 %79 }
  0x8a   :  { %v2857_v14 = vsel %vm96_vm1, 1.0, %v3397_v5  ;;  %vm84_vm2 = vcmp.eq.s32.totalorder %v80_v13, %v3543_v11 }
  0x8b   :  { %3059 = vmatprep.mubr.msk.f32.mxu0 %vm111_vm0, %v2857_v14  ;;  %v2855_v19 = vsel %vm84_vm2, 1.0, %v3397_v5  ;;  %v324_v14 = vld [vmem:[%s3997_s2] sm:$0x3]  ;;  %s3403_s2 = smov 48  }
  0x8c   :  { %v95_v17 = vpop.permute.xlu0 %94  ;;  %vm325_vm9 = vcmp.gt.s32.totalorder %v324_v14, 0 }
  0x8d   :  { %vm97_vm3 = vcmp.eq.s32.totalorder %v95_v17, %v3543_v11  ;;  %v83_v27 = vpop.permute.xlu1 %82  ;;  %v3402_v17 = vmov -10000.0  }
  0x8e   :  { %v2858_v20 = vsel %vm97_vm3, 1.0, %v3397_v5  ;;  %vm85_vm5 = vcmp.eq.s32.totalorder %v83_v27, %v3543_v11 }
  0x8f   :  { %3060 = vmatmul.mubr.msk.f32.vlgmr.msra.gmra.mrb[0].mxu0 %vm111_vm0, %v2858_v20  ;;  %v2856_v28 = vsel %vm85_vm5, 1.0, %v3397_v5 }
  0x90   :  { %3276 = vmatpush3.bf16.msra.mxu0 %v3273_v9  ;;  %3078 = vmatprep.mubr.msk.f32.mxu0 %vm193_vm4, %v2855_v19 }
  0x91   :  { %3278 = vmatprep.subr.bf16.mxu0 %v3277_v18 }
  0x94   :  { %3280 = vmatpush3.bf16.msra.mxu0 %v3277_v18  ;;  %v3635_v18 = vsel %vm325_vm9, 0.0, %v3402_v17 }
  0x95   :  { %3282 = vmatprep.subr.bf16.mxu0 %v3281_v23  ;;  %v3638_v19 = vrot.slane %v3635_v18, %v480_v16 }
  0x98   :  { %3284 = vmatpush3.bf16.msra.mxu0 %v3281_v23 }
  0x99   :  { %3286 = vmatprep.subr.bf16.mxu0 %v3285_v26 }
  0x9c   :  { %3288 = vmatpush3.bf16.msra.mxu0 %v3285_v26 }
  0x9d   :  { %3099 = vmatprep.subr.mxu0 %v3397_v5 }
  0x9f   :  { %3079 = vmatmul.mubr.msk.f32.vlgmr.msra.gmra.mrb[0].mxu0 %vm193_vm4, %v2856_v28 }
  0xa0   :  { %3101 = vmatprep.mubr.msk.f32.mxu0 %vm3398_vm7, %v3397_v5 }
 0x172   :  { %v3080_v30 = vpop.f32.mrb[0].mxu0 }
 0x173   :  { %v277_v31 = vadd.f32 %v3080_v30, %v275_v29  ;;  %v266_v32 = vpop.f32.mrb[1].mxu0 }
 0x174   :  { %v276_v33 = vadd.f32 %v275_v29, %v266_v32 }
 0x175   :  { %v284_v34 = vsel %vm280_vm6, %v277_v31, 0.0 }
 0x176   :  { %285 = vadd.xlane.f32.xlu1 %v284_v34  ;;  %v281_v35 = vsel %vm280_vm6, %v276_v33, 0.0 }
 0x177   :  { %282 = vadd.xlane.f32.xlu0 %v281_v35 }
 0x203   :  { %v286_v36 = vpop.xlane.xlu1 %285 }
 0x204   :  { %v289_v37 = vmul.f32 0.03125, %v286_v36  ;;  %v283_v38 = vpop.xlane.xlu0 %282 }
 0x205   :  { %v288_v39 = vmul.f32 0.03125, %v283_v38 }
 0x206   :  { %v291_v40 = vsub.f32 %v277_v31, %v289_v37 }
 0x207   :  { %v290_v41 = vsub.f32 %v276_v33, %v288_v39  ;;  %v3304_v39 = vld [vmem:[%s3998_s10 + $0x8] sm:$0xff]  }
 0x208   :  { %v293_v44 = vmul.f32 %v291_v40, %v291_v40 }
 0x209   :  { %v292_v42 = vmul.f32 %v290_v41, %v290_v41 }
 0x20a   :  { %v297_v45 = vsel %vm280_vm6, %v293_v44, 0.0 }
 0x20b   :  { %v294_v43 = vsel %vm280_vm6, %v292_v42, 0.0 }
 0x20c   :  { %295 = vadd.xlane.f32.xlu0 %v294_v43 }
 0x210   :  { %298 = vadd.xlane.f32.xlu0 %v297_v45 }
 0x299   :  { %v296_v48 = vpop.xlane.xlu0 %295 }
 0x29a   :  { %v300_v49 = vmul.f32 0.03125, %v296_v48  ;;  %v3669_v48 = vld [vmem:[%s3998_s10] sm:$0xff]  }
 0x29c   :  { %v302_v50 = vadd.f32 1e-06, %v300_v49 }
 0x29d   :  { %v299_v51 = vpop.xlane.xlu0 %298 }
 0x29e   :  { %3324 = vrsqrt.f32 %v302_v50  ;;  %v301_v52 = vmul.f32 0.03125, %v299_v51 }
 0x2a0   :  { %v303_v53 = vadd.f32 1e-06, %v301_v52 }
 0x2a2   :  { %3326 = vrsqrt.f32 %v303_v53 }
 0x2a8   :  { %v3325_v54 = vpop.eup %3324 }
 0x2a9   :  { %v306_v55 = vmul.f32 %v3325_v54, %v290_v41 }
 0x2ab   :  { %v314_v59 = vmul.f32 %v2863_v56, %v306_v55 }
 0x2ac   :  { %v3327_v57 = vpop.eup %3326 }
 0x2ad   :  { %v307_v58 = vmul.f32 %v3327_v57, %v291_v40  ;;  %v3601_v62 = vadd.f32 %v2864_v60, %v314_v59 }
 0x2af   :  { %v315_v61 = vmul.f32 %v2863_v56, %v307_v58 }
 0x2b1   :  { %v3603_v63 = vadd.f32 %v2864_v60, %v315_v61 }
 0x2b3   :  { %v327_v0 = vpack.c.bf16 %v3603_v63, %v3601_v62 }
 0x2b5   :  { %3086 = vmatmul.mubr.msk.bf16.vlgmr.msra.gmra.mrb[0].mxu1 %vm280_vm6, %v327_v0 }
 0x2b6   :  { %3091 = vmatprep.mubr.msk.f32.mxu1 %vm3398_vm7, %v3397_v5 }
 0x388   :  { %v388_v2 = vpop.f32.mrb[0].mxu1 }
 0x389   :  { %v389_v3 = vadd.f32 %v2865_v1, %v388_v2  ;;  %v3087_v4 = vpop.f32.mrb[1].mxu1 }
 0x38a   :  { %v391_v6 = vpop.f32.mrb[2].mxu1 }
 0x38b   :  { %v3613_v7 = vadd.f32 %v2865_v1, %v391_v6  ;;  %573 = vrot.lane.b32.xlu0 %v389_v3, %s3399_s7  ;;  %400 = vrot.lane.b32.xlu1 %v389_v3, %s3400_s28  ;;  %v3088_v8 = vpop.f32.mrb[3].mxu1  ;;  %v917_v6 = vsub.s32 1, %v3632_v15  ;;  %v3704_v15 = vld [vmem:[%s3999_s11] ss:$0 sm:$0xff] }
 0x38d   :  { %v3693_v8 = vrot.slane %v3635_v18, %v917_v6 }
 0x38f   :  { %571 = vrot.lane.b32.xlu1 %v389_v3, %s3401_s30 }
 0x3fd   :  { %v574_v9 = vpop.permute.xlu0 %573  ;;  %v401_v12 = vpop.permute.xlu1 %400 }
 0x3fe   :  { %3090 = vmatpush3.xpose.msk.msra.mxu1 %vm402_vm8, %v401_v12  ;;  %3100 = vmatpush3.xpose.msk.msra.mxu0 %vm402_vm8, %v574_v9 }
 0x3ff   :  { %3094 = vmatprep.subr.mxu1 %v3397_v5  ;;  %3109 = vmatprep.subr.bf16.mxu0 %v3397_v5 }
 0x401   :  { %3092 = vmatmul.mubr.msk.f32.vlgmr.msra.gmra.mrb[4].mxu1 %vm402_vm8, %v389_v3  ;;  %v572_v13 = vpop.permute.xlu1 %571 }
 0x402   :  { %3102 = vmatmul.mubr.msk.f32.vlgmr.msra.gmra.mrb[2].mxu0 %vm402_vm8, %v572_v13  ;;  %3096 = vmatprep.mubr.msk.f32.mxu1 %vm3398_vm7, %v3397_v5 }
 0x403   :  { %3111 = vmatprep.mubr.msk.bf16.mxu0 %vm3398_vm7, %v3397_v5  ;;  %3110 = vmatpush3.bf16.msra.mxu0 %v3304_v39 }
 0x404   :  { %3121 = vmatprep.subr.mxu0 %v3397_v5 }
 0x4d4   :  { %v473_v20 = vpop.f32.mrb[4].mxu1 }
 0x4d5   :  { %v477_v21 = vmul.f32 0.25, %v473_v20  ;;  %v3093_v22 = vpop.f32.mrb[5].mxu1  ;;  %v645_v23 = vpop.f32.mrb[2].mxu0 }
 0x4d6   :  { %v649_v24 = vmul.f32 0.25, %v645_v23  ;;  %v3103_v25 = vpop.f32.mrb[3].mxu0 }
 0x4d7   :  { %v482_v26 = vadd.f32 %v3638_v19, %v477_v21 }
 0x4d8   :  { %v650_v10 = vadd.f32 %v649_v24, %v3638_v19 }
 0x4d9   :  { %v483_v27 = vsel %vm111_vm0, %v482_v26, -inf }
 0x4da   :  { %484 = vmax.xlane.f32.xlu1 %v483_v27  ;;  %v651_v28 = vsel %vm111_vm0, %v650_v10, -inf }
 0x4db   :  { %652 = vmax.xlane.f32.xlu0 %v651_v28 }
 0x567   :  { %v485_v29 = vpop.xlane.xlu1 %484 }
 0x568   :  { %v486_v30 = vsub.f32 %v482_v26, %v485_v29  ;;  %v653_v31 = vpop.xlane.xlu0 %652 }
 0x569   :  { %v654_v32 = vsub.f32 %v650_v10, %v653_v31 }
 0x56a   :  { %v487_v33 = vmul.f32 1.442695, %v486_v30 }
 0x56b   :  { %v655_v34 = vmul.f32 1.442695, %v654_v32 }
 0x56c   :  { %3328 = vpow2.f32 %v487_v33 }
 0x56d   :  { %3330 = vpow2.f32 %v655_v34 }
 0x576   :  { %v3329_v35 = vpop.eup %3328 }
 0x577   :  { %v3331_v36 = vpop.eup %3330  ;;  %v489_v37 = vsel %vm111_vm0, %v3329_v35, 0.0 }
 0x578   :  { %490 = vadd.xlane.f32.xlu0 %v489_v37  ;;  %v657_v38 = vsel %vm111_vm0, %v3331_v36, 0.0 }
 0x579   :  { %658 = vadd.xlane.f32.xlu1 %v657_v38 }
 0x58a   :  { %662 = vrot.lane.b32.xlu1 %v389_v3, %s3403_s2 }
 0x58e   :  { %838 = vrot.lane.b32.xlu1 %v3613_v7, %s3400_s28  ;;  %494 = vrot.lane.b32.xlu0 %v389_v3, %s3404_s4 }
 0x592   :  { %1008 = vrot.lane.b32.xlu1 %v3613_v7, %s3401_s30  ;;  %1010 = vrot.lane.b32.xlu0 %v3613_v7, %s3399_s7 }
 0x605   :  { %v491_v40 = vpop.xlane.xlu0 %490 }
 0x606   :  { %3332 = vrcp.f32 %v491_v40  ;;  %v659_v41 = vpop.xlane.xlu1 %658 }
 0x607   :  { %3334 = vrcp.f32 %v659_v41 }
 0x609   :  { %v495_v42 = vpop.permute.xlu0 %494 }
 0x60a   :  { %3095 = vmatpush3.msra.mxu1 %v495_v42  ;;  %v663_v46 = vpop.permute.xlu1 %662 }
 0x60b   :  { %3104 = vmatprep.subr.mxu1 %v3397_v5 }
 0x60d   :  { %v1011_v56 = vpop.permute.xlu0 %1010 }
 0x60e   :  { %v839_v55 = vpop.permute.xlu1 %838 }
 0x610   :  { %v3333_v43 = vpop.eup %3332 }
 0x611   :  { %v493_v44 = vmul.f32 %v3333_v43, %v3329_v35  ;;  %v3335_v45 = vpop.eup %3334 }
 0x612   :  { %v661_v47 = vmul.f32 %v3335_v45, %v3331_v36  ;;  %v1009_v57 = vpop.permute.xlu1 %1008 }
 0x613   :  { %3097 = vmatmul.mubr.msk.f32.vlgmr.msra.gmra.mrb[6].mxu1 %vm111_vm0, %v493_v44 }
 0x614   :  { %3105 = vmatpush3.msra.mxu1 %v663_v46  ;;  %3106 = vmatprep.mubr.msk.f32.mxu1 %vm3398_vm7, %v3397_v5 }
 0x615   :  { %3115 = vmatprep.subr.bf16.mxu1 %v3397_v5 }
 0x617   :  { %3107 = vmatmul.mubr.msk.f32.vlgmr.msra.gmra.mrb[8].mxu1 %vm111_vm0, %v661_v47 }
 0x618   :  { %3117 = vmatprep.mubr.msk.bf16.mxu1 %vm3398_vm7, %v3397_v5  ;;  %3116 = vmatpush3.bf16.msra.mxu1 %v3669_v48 }
 0x619   :  { %3126 = vmatprep.subr.mxu1 %v3397_v5 }
 0x6e6   :  { %v566_v49 = vpop.f32.mrb[6].mxu1 }
 0x6e7   :  { %v570_v50 = vpack.c.bf16 %v566_v49, %v566_v49  ;;  %v3098_v51 = vpop.f32.mrb[7].mxu1 }
 0x6e9   :  { %3118 = vmatmul.mubr.msk.bf16.vlgmr.msra.gmra.mrb[12].mxu1 %vm402_vm8, %v570_v50 }
 0x6ea   :  { %v734_v52 = vpop.f32.mrb[8].mxu1  ;;  %3128 = vmatprep.mubr.msk.f32.mxu1 %vm3398_vm7, %v3397_v5 }
 0x6eb   :  { %v738_v53 = vpack.c.bf16 %v734_v52, %v734_v52  ;;  %v3108_v54 = vpop.f32.mrb[9].mxu1 }
 0x6ed   :  { %3112 = vmatmul.mubr.msk.bf16.vlgmr.msra.gmra.mrb[4].mxu0 %vm402_vm8, %v738_v53 }
 0x6ee   :  { %3122 = vmatpush3.xpose.msk.msra.mxu0 %vm402_vm8, %v839_v55  ;;  %3123 = vmatprep.mubr.msk.f32.mxu0 %vm3398_vm7, %v3397_v5 }
 0x6ef   :  { %3131 = vmatprep.subr.mxu0 %v3397_v5 }
 0x6f5   :  { %3124 = vmatmul.mubr.msk.f32.vlgmr.msra.gmra.mrb[8].mxu0 %vm402_vm8, %v3613_v7 }
 0x6f6   :  { %3132 = vmatpush3.xpose.msk.msra.mxu0 %vm402_vm8, %v1011_v56  ;;  %3133 = vmatprep.mubr.msk.f32.mxu0 %vm3398_vm7, %v3397_v5 }
 0x6f7   :  { %3141 = vmatprep.subr.bf16.mxu0 %v3397_v5 }
 0x6f9   :  { %3134 = vmatmul.mubr.msk.f32.vlgmr.msra.gmra.mrb[10].mxu0 %vm402_vm8, %v1009_v57 }
 0x6fa   :  { %3142 = vmatpush3.bf16.msra.mxu0 %v3304_v39  ;;  %3143 = vmatprep.mubr.msk.bf16.mxu0 %vm3398_vm7, %v3397_v5 }
 0x6fb   :  { %3153 = vmatprep.subr.bf16.mxu0 %v3397_v5 }
 0x7bc   :  { %v831_v58 = vpop.f32.mrb[12].mxu1 }
 0x7bd   :  { %v3119_v59 = vpop.f32.mrb[13].mxu1 }
 0x7be   :  { %v834_v60 = vpop.f32.mrb[14].mxu1 }
 0x7bf   :  { %v3120_v61 = vpop.f32.mrb[15].mxu1 }
 0x7c0   :  { %v782_v0 = vpop.f32.mrb[4].mxu0 }
 0x7c1   :  { %v832_v1 = vadd.f32 %v831_v58, %v782_v0  ;;  %v3113_v2 = vpop.f32.mrb[5].mxu0 }
 0x7c2   :  { %v785_v3 = vpop.f32.mrb[6].mxu0 }
 0x7c3   :  { %v3114_v4 = vpop.f32.mrb[7].mxu0  ;;  %v1269_v18 = vadd.f32 %v3704_v15, %v832_v1 }
 0x7c5   :  { %v1271_v24 = vadd.f32 %v1269_v18, %v3601_v62 }
 0x7c7   :  { %v1275_v25 = vsel %vm280_vm6, %v1271_v24, 0.0 }
 0x7c8   :  { %v910_v9 = vpop.f32.mrb[8].mxu0 }
 0x7c9   :  { %v914_v12 = vmul.f32 0.25, %v910_v9  ;;  %v3125_v13 = vpop.f32.mrb[9].mxu0 }
 0x7ca   :  { %v3307_v13 = vld [vmem:[%s4000_s14 + $0x8] sm:$0xff]  }
 0x7cb   :  { %v919_v14 = vadd.f32 %v3693_v8, %v914_v12  ;;  %v3306_v12 = vld [vmem:[%s4000_s14] sm:$0xff]  }
 0x7cc   :  { %v1082_v16 = vpop.f32.mrb[10].mxu0 }
 0x7cd   :  { %v1086_v17 = vmul.f32 0.25, %v1082_v16  ;;  %v3135_v20 = vpop.f32.mrb[11].mxu0  ;;  %v920_v21 = vsel %vm111_vm0, %v919_v14, -inf }
 0x7ce   :  { %921 = vmax.xlane.f32.xlu0 %v920_v21 }
 0x7cf   :  { %v1087_v22 = vadd.f32 %v1086_v17, %v3693_v8 }
 0x7d1   :  { %v1088_v23 = vsel %vm111_vm0, %v1087_v22, -inf }
 0x7d2   :  { %1089 = vmax.xlane.f32.xlu1 %v1088_v23 }
 0x7e3   :  { %931 = vrot.lane.b32.xlu1 %v3613_v7, %s3404_s4 }
 0x807   :  { %1276 = vadd.xlane.f32.xlu1 %v1275_v25 }
 0x85b   :  { %v922_v26 = vpop.xlane.xlu0 %921 }
 0x85c   :  { %v923_v10 = vsub.f32 %v919_v14, %v922_v26  ;;  %v2889_v26 = vld [vmem:[%s4002_s13] ss:$0 sm:$0xff] }
 0x85e   :  { %v924_v27 = vmul.f32 1.442695, %v923_v10 }
 0x85f   :  { %v1090_v28 = vpop.xlane.xlu1 %1089 }
 0x860   :  { %3336 = vpow2.f32 %v924_v27  ;;  %v1091_v29 = vsub.f32 %v1087_v22, %v1090_v28 }
 0x862   :  { %v1092_v30 = vmul.f32 1.442695, %v1091_v29 }
 0x863   :  { %v932_v31 = vpop.permute.xlu1 %931 }
 0x864   :  { %3338 = vpow2.f32 %v1092_v30  ;;  %3127 = vmatpush3.msra.mxu1 %v932_v31  ;;  %v3308_v30 = vld [vmem:[%s4003_s16] sm:$0xff]   ;;  %v3309_v31 = vld [vmem:[%s4003_s16 + $0x8] sm:$0xff]  }
 0x865   :  { %3136 = vmatprep.subr.mxu1 %v3397_v5 }
 0x86a   :  { %v3337_v32 = vpop.eup %3336 }
 0x86b   :  { %v926_v33 = vsel %vm111_vm0, %v3337_v32, 0.0 }
 0x86c   :  { %927 = vadd.xlane.f32.xlu0 %v926_v33  ;;  %v3311_v33 = vld [vmem:[%s4003_s16 + $0x18] sm:$0xff]  }
 0x86e   :  { %v3339_v62 = vpop.eup %3338 }
 0x86f   :  { %v1094_v34 = vsel %vm111_vm0, %v3339_v62, 0.0 }
 0x870   :  { %1095 = vadd.xlane.f32.xlu0 %v1094_v34 }
 0x886   :  { %1099 = vrot.lane.b32.xlu0 %v3613_v7, %s3403_s2 }
 0x894   :  { %v1277_v35 = vpop.xlane.xlu1 %1276 }
 0x895   :  { %v1281_v36 = vmul.f32 0.03125, %v1277_v35 }
 0x897   :  { %v3714_v37 = vsub.f32 %v1271_v24, %v1281_v36 }
 0x899   :  { %v1285_v38 = vmul.f32 %v3714_v37, %v3714_v37 }
 0x89b   :  { %v1287_v39 = vsel %vm280_vm6, %v1285_v38, 0.0 }
 0x89c   :  { %1288 = vadd.xlane.f32.xlu1 %v1287_v39 }
 0x8f9   :  { %v928_v40 = vpop.xlane.xlu0 %927 }
 0x8fa   :  { %3340 = vrcp.f32 %v928_v40 }
 0x8fd   :  { %v1096_v41 = vpop.xlane.xlu0 %1095 }
 0x8fe   :  { %3342 = vrcp.f32 %v1096_v41 }
 0x901   :  { %v1100_v44 = vpop.permute.xlu0 %1099 }
 0x904   :  { %v3341_v42 = vpop.eup %3340 }
 0x905   :  { %v930_v43 = vmul.f32 %v3341_v42, %v3337_v32  ;;  %v3310_v32 = vld [vmem:[%s4003_s16 + $0x10] sm:$0xff]  }
 0x907   :  { %3129 = vmatmul.mubr.msk.f32.vlgmr.msra.gmra.mrb[10].mxu1 %vm111_vm0, %v930_v43 }
 0x908   :  { %v3343_v7 = vpop.eup %3342  ;;  %3137 = vmatpush3.msra.mxu1 %v1100_v44  ;;  %3138 = vmatprep.mubr.msk.f32.mxu1 %vm3398_vm7, %v3397_v5 }
 0x909   :  { %v1098_v45 = vmul.f32 %v3343_v7, %v3339_v62  ;;  %3147 = vmatprep.subr.bf16.mxu1 %v3397_v5  ;;  %v2890_v62 = vld [vmem:[%s4004_s15] ss:$0 sm:$0xff] }
 0x90b   :  { %3139 = vmatmul.mubr.msk.f32.vlgmr.msra.gmra.mrb[16].mxu1 %vm111_vm0, %v1098_v45 }
 0x90c   :  { %3148 = vmatpush3.bf16.msra.mxu1 %v3669_v48  ;;  %3149 = vmatprep.mubr.msk.bf16.mxu1 %vm3398_vm7, %v3397_v5 }
 0x90d   :  { %3161 = vmatprep.subr.bf16.mxu1 %v3397_v5 }
 0x9da   :  { %v1003_v46 = vpop.f32.mrb[10].mxu1 }
 0x9db   :  { %v1007_v47 = vpack.c.bf16 %v1003_v46, %v1003_v46  ;;  %v3130_v49 = vpop.f32.mrb[11].mxu1 }
 0x9dd   :  { %3150 = vmatmul.mubr.msk.bf16.vlgmr.msra.gmra.mrb[20].mxu1 %vm402_vm8, %v1007_v47 }
 0x9de   :  { %v1171_v50 = vpop.f32.mrb[16].mxu1  ;;  %3169 = vmatprep.mubr.msk.bf16.mxu1 %vm3398_vm7, %v3397_v5  ;;  %3162 = vmatpush3.bf16.msra.mxu1 %v3308_v30  ;;  %v2900_v30 = vld [vmem:[%s4006_s18] ss:$0 sm:$0xff] }
 0x9df   :  { %v1175_v51 = vpack.c.bf16 %v1171_v50, %v1171_v50  ;;  %v3140_v52 = vpop.f32.mrb[17].mxu1  ;;  %3163 = vmatprep.subr.bf16.mxu1 %v3397_v5 }
 0x9e1   :  { %3144 = vmatmul.mubr.msk.bf16.vlgmr.msra.gmra.mrb[12].mxu0 %vm402_vm8, %v1175_v51 }
 0x9e2   :  { %3157 = vmatprep.mubr.msk.bf16.mxu0 %vm3398_vm7, %v3397_v5  ;;  %3154 = vmatpush3.bf16.msra.mxu0 %v3306_v12 }
 0x9e3   :  { %3155 = vmatprep.subr.bf16.mxu0 %v3397_v5  ;;  %3164 = vmatpush3.bf16.msra.mxu1 %v3309_v31 }
 0x9e4   :  { %3165 = vmatprep.subr.bf16.mxu1 %v3397_v5 }
 0x9e6   :  { %3156 = vmatpush3.bf16.msra.mxu0 %v3307_v13 }
 0x9e7   :  { %3173 = vmatprep.subr.bf16.mxu0 %v3397_v5  ;;  %3166 = vmatpush3.bf16.msra.mxu1 %v3310_v32 }
 0x9e8   :  { %3167 = vmatprep.subr.bf16.mxu1 %v3397_v5 }
 0x9eb   :  { %3168 = vmatpush3.bf16.msra.mxu1 %v3311_v33 }
 0x9ec   :  { %3186 = vmatprep.subr.mxu1 %v3397_v5 }
 0xab0   :  { %v1256_v48 = vpop.f32.mrb[20].mxu1 }
 0xab1   :  { %v3151_v53 = vpop.f32.mrb[21].mxu1 }
 0xab2   :  { %v1259_v54 = vpop.f32.mrb[22].mxu1 }
 0xab3   :  { %v3152_v55 = vpop.f32.mrb[23].mxu1 }
 0xab4   :  { %v1213_v56 = vpop.f32.mrb[12].mxu0 }
 0xab5   :  { %v1257_v57 = vadd.f32 %v1256_v48, %v1213_v56  ;;  %v3145_v58 = vpop.f32.mrb[13].mxu0 }
 0xab6   :  { %v1216_v59 = vpop.f32.mrb[14].mxu0  ;;  %v2894_v58 = vld [vmem:[%s4005_s17] ss:$0 sm:$0xff] }
 0xab7   :  { %v1270_v60 = vadd.f32 %v3704_v15, %v1257_v57  ;;  %v3146_v61 = vpop.f32.mrb[15].mxu0  ;;  %v2888_v15 = vld [vmem:[%s4001_s12] ss:$0 sm:$0xff] }
 0xab9   :  { %v1272_v0 = vadd.f32 %v1270_v60, %v3603_v63  ;;  %v1289_v63 = vpop.xlane.xlu1 %1288 }
 0xaba   :  { %v1293_v14 = vmul.f32 0.03125, %v1289_v63 }
 0xabb   :  { %v1278_v1 = vsel %vm280_vm6, %v1272_v0, 0.0 }
 0xabc   :  { %1279 = vadd.xlane.f32.xlu0 %v1278_v1  ;;  %v1295_v16 = vadd.f32 1e-06, %v1293_v14 }
 0xabe   :  { %3344 = vrsqrt.f32 %v1295_v16 }
 0xac8   :  { %v3345_v22 = vpop.eup %3344 }
 0xac9   :  { %v1299_v23 = vmul.f32 %v3345_v22, %v3714_v37 }
 0xacb   :  { %v1307_v24 = vmul.f32 %v2888_v15, %v1299_v23 }
 0xacd   :  { %v1315_v27 = vadd.f32 %v2889_v26, %v1307_v24 }
 0xb49   :  { %v1280_v2 = vpop.xlane.xlu0 %1279 }
 0xb4a   :  { %v1282_v3 = vmul.f32 0.03125, %v1280_v2 }
 0xb4c   :  { %v1284_v4 = vsub.f32 %v1272_v0, %v1282_v3 }
 0xb4e   :  { %v1286_v6 = vmul.f32 %v1284_v4, %v1284_v4 }
 0xb50   :  { %v1290_v9 = vsel %vm280_vm6, %v1286_v6, 0.0 }
 0xb51   :  { %1291 = vadd.xlane.f32.xlu0 %v1290_v9 }
 0xbde   :  { %v1292_v17 = vpop.xlane.xlu0 %1291 }
 0xbdf   :  { %v1294_v20 = vmul.f32 0.03125, %v1292_v17 }
 0xbe1   :  { %v1296_v21 = vadd.f32 1e-06, %v1294_v20 }
 0xbe3   :  { %3346 = vrsqrt.f32 %v1296_v21 }
 0xbed   :  { %v3347_v18 = vpop.eup %3346 }
 0xbee   :  { %v1300_v25 = vmul.f32 %v3347_v18, %v1284_v4  ;;  %v3313_v18 = vld [vmem:[%s4027_s1 + $0x18] sm:$0xff]  }
 0xbf0   :  { %v1308_v10 = vmul.f32 %v2888_v15, %v1300_v25  ;;  %v3312_v15 = vld [vmem:[%s4027_s1 + $0x10] sm:$0xff]  }
 0xbf2   :  { %v1316_v28 = vadd.f32 %v2889_v26, %v1308_v10 }
 0xbf4   :  { %v1317_v29 = vpack.c.bf16 %v1316_v28, %v1315_v27 }
 0xbf6   :  { %3158 = vmatmul.mubr.msk.bf16.vlgmr.msra.gmra.mrb[16].mxu0 %vm280_vm6, %v1317_v29 }
 0xbf7   :  { %3177 = vmatprep.mubr.msk.bf16.mxu0 %vm3398_vm7, %v3397_v5  ;;  %3174 = vmatpush3.bf16.msra.mxu0 %v3312_v15 }
 0xbf8   :  { %3175 = vmatprep.subr.bf16.mxu0 %v3397_v5 }
 0xbfb   :  { %3176 = vmatpush3.bf16.msra.mxu0 %v3313_v18 }
 0xbfc   :  { %3181 = vmatprep.subr.mxu0 %v3397_v5 }
 0xcc9   :  { %v1378_v34 = vpop.f32.mrb[16].mxu0 }
 0xcca   :  { %v1379_v35 = vadd.f32 %v2890_v62, %v1378_v34  ;;  %v3159_v36 = vpop.f32.mrb[17].mxu0  ;;  %v2901_v34 = vld [vmem:[%s4007_s19] ss:$0 sm:$0xff] }
 0xccb   :  { %v1381_v37 = vpop.f32.mrb[18].mxu0 }
 0xccc   :  { %v1387_v38 = vmul.f32 0.044715, %v1379_v35  ;;  %v1382_v39 = vadd.f32 %v2890_v62, %v1381_v37  ;;  %v3160_v40 = vpop.f32.mrb[19].mxu0  ;;  %v1385_v48 = vmul.f32 0.5, %v1379_v35 }
 0xcce   :  { %v1389_v41 = vmul.f32 %v1387_v38, %v1379_v35  ;;  %v1388_v42 = vmul.f32 0.044715, %v1382_v39  ;;  %v1386_v53 = vmul.f32 0.5, %v1382_v39 }
 0xcd0   :  { %v1391_v43 = vmul.f32 %v1389_v41, %v1379_v35  ;;  %v1390_v44 = vmul.f32 %v1388_v42, %v1382_v39 }
 0xcd2   :  { %v1393_v7 = vadd.f32 %v1391_v43, %v1379_v35  ;;  %v1392_v45 = vmul.f32 %v1390_v44, %v1382_v39 }
 0xcd4   :  { %v1395_v46 = vmul.f32 0.7978846, %v1393_v7  ;;  %v1394_v47 = vadd.f32 %v1392_v45, %v1382_v39  ;;  %v2907_v39 = vld [vmem:[%s3996_s9 + $0x1] ss:$0 sm:$0xff] }
 0xcd6   :  { %3348 = vtanh.f32 %v1395_v46  ;;  %v1396_v49 = vmul.f32 0.7978846, %v1394_v47 }
 0xcd8   :  { %3350 = vtanh.f32 %v1396_v49 }
 0xce0   :  { %v3349_v50 = vpop.eup %3348 }
 0xce1   :  { %v1399_v51 = vadd.f32 1.0, %v3349_v50 }
 0xce2   :  { %v3351_v52 = vpop.eup %3350 }
 0xce3   :  { %v1400_v54 = vadd.f32 1.0, %v3351_v52  ;;  %v1401_v55 = vmul.f32 %v1399_v51, %v1385_v48 }
 0xce5   :  { %v1402_v56 = vmul.f32 %v1400_v54, %v1386_v53 }
 0xce7   :  { %v1403_v57 = vpack.c.bf16 %v1402_v56, %v1401_v55 }
 0xce9   :  { %3170 = vmatmul.mubr.msk.bf16.vlgmr.msra.gmra.mrb[24].mxu1 %vm193_vm4, %v1403_v57 }
 0xcea   :  { %3188 = vmatprep.mubr.msk.f32.mxu1 %vm3398_vm7, %v3397_v5 }
 0xdbc   :  { %v1480_v59 = vpop.f32.mrb[24].mxu1 }
 0xdbd   :  { %v1481_v60 = vadd.f32 %v2894_v58, %v1480_v59  ;;  %v3171_v61 = vpop.f32.mrb[25].mxu1 }
 0xdbe   :  { %v1483_v0 = vpop.f32.mrb[26].mxu1 }
 0xdbf   :  { %v1484_v1 = vadd.f32 %v2894_v58, %v1483_v0  ;;  %v3172_v2 = vpop.f32.mrb[27].mxu1  ;;  %v1487_v3 = vadd.f32 %v1481_v60, %v1315_v27 }
 0xdc1   :  { %v1491_v4 = vsel %vm280_vm6, %v1487_v3, 0.0  ;;  %v1488_v6 = vadd.f32 %v1484_v1, %v1316_v28 }
 0xdc2   :  { %1492 = vadd.xlane.f32.xlu1 %v1491_v4 }
 0xdc3   :  { %v1494_v9 = vsel %vm280_vm6, %v1488_v6, 0.0 }
 0xdc4   :  { %1495 = vadd.xlane.f32.xlu0 %v1494_v9 }
 0xe4f   :  { %v1493_v12 = vpop.xlane.xlu1 %1492 }
 0xe50   :  { %v1497_v13 = vmul.f32 0.03125, %v1493_v12 }
 0xe51   :  { %v1496_v63 = vpop.xlane.xlu0 %1495 }
 0xe52   :  { %v1499_v14 = vsub.f32 %v1487_v3, %v1497_v13  ;;  %v1498_v16 = vmul.f32 0.03125, %v1496_v63 }
 0xe54   :  { %v1500_v17 = vsub.f32 %v1488_v6, %v1498_v16  ;;  %v1501_v20 = vmul.f32 %v1499_v14, %v1499_v14 }
 0xe56   :  { %v1503_v21 = vsel %vm280_vm6, %v1501_v20, 0.0  ;;  %v1502_v22 = vmul.f32 %v1500_v17, %v1500_v17 }
 0xe57   :  { %1504 = vadd.xlane.f32.xlu1 %v1503_v21  ;;  %v3855_v21 = vld [vmem:[%s3998_s10 + $0x10] sm:$0xff]  }
 0xe58   :  { %v1506_v23 = vsel %vm280_vm6, %v1502_v22, 0.0 }
 0xe59   :  { %1507 = vadd.xlane.f32.xlu0 %v1506_v23 }
 0xee4   :  { %v1505_v24 = vpop.xlane.xlu1 %1504 }
 0xee5   :  { %v1509_v25 = vmul.f32 0.03125, %v1505_v24 }
 0xee6   :  { %v1508_v26 = vpop.xlane.xlu0 %1507 }
 0xee7   :  { %v1511_v10 = vadd.f32 1e-06, %v1509_v25  ;;  %v1510_v27 = vmul.f32 0.03125, %v1508_v26 }
 0xee9   :  { %3352 = vrsqrt.f32 %v1511_v10  ;;  %v1512_v28 = vadd.f32 1e-06, %v1510_v27 }
 0xeeb   :  { %3354 = vrsqrt.f32 %v1512_v28 }
 0xef3   :  { %v3353_v29 = vpop.eup %3352 }
 0xef4   :  { %v1515_v31 = vmul.f32 %v3353_v29, %v1499_v14 }
 0xef5   :  { %v3355_v32 = vpop.eup %3354 }
 0xef6   :  { %v1523_v33 = vmul.f32 %v2900_v30, %v1515_v31  ;;  %v1516_v62 = vmul.f32 %v3355_v32, %v1500_v17 }
 0xef8   :  { %v1524_v35 = vmul.f32 %v2900_v30, %v1516_v62  ;;  %v3799_v36 = vadd.f32 %v2901_v34, %v1523_v33 }
 0xefa   :  { %v3801_v37 = vadd.f32 %v2901_v34, %v1524_v35 }
 0xefc   :  { %v1533_v38 = vpack.c.bf16 %v3801_v37, %v3799_v36 }
 0xefe   :  { %3178 = vmatmul.mubr.msk.bf16.vlgmr.msra.gmra.mrb[20].mxu0 %vm280_vm6, %v1533_v38 }
 0xeff   :  { %3183 = vmatprep.mubr.msk.f32.mxu0 %vm3398_vm7, %v3397_v5 }
 0xfd1   :  { %v1596_v40 = vpop.f32.mrb[20].mxu0 }
 0xfd2   :  { %v1597_v41 = vadd.f32 %v2907_v39, %v1596_v40  ;;  %v3179_v42 = vpop.f32.mrb[21].mxu0 }
 0xfd3   :  { %v1599_v43 = vpop.f32.mrb[22].mxu0 }
 0xfd4   :  { %v3811_v44 = vadd.f32 %v2907_v39, %v1599_v43  ;;  %1777 = vrot.lane.b32.xlu0 %v1597_v41, %s3399_s7  ;;  %1609 = vrot.lane.b32.xlu1 %v1597_v41, %s3400_s28  ;;  %v3180_v7 = vpop.f32.mrb[23].mxu0 }
 0xfd8   :  { %1775 = vrot.lane.b32.xlu1 %v1597_v41, %s3401_s30 }
0x1046   :  { %v1610_v45 = vpop.permute.xlu1 %1609  ;;  %v1778_v46 = vpop.permute.xlu0 %1777 }
0x1047   :  { %3182 = vmatpush3.xpose.msk.msra.mxu0 %vm402_vm8, %v1610_v45 }
0x1048   :  { %3191 = vmatprep.subr.mxu0 %v3397_v5 }
0x104a   :  { %3184 = vmatmul.mubr.msk.f32.vlgmr.msra.gmra.mrb[24].mxu0 %vm402_vm8, %v1597_v41  ;;  %v1776_v47 = vpop.permute.xlu1 %1775 }
0x104b   :  { %3192 = vmatpush3.xpose.msk.msra.mxu0 %vm402_vm8, %v1778_v46  ;;  %3193 = vmatprep.mubr.msk.f32.mxu0 %vm3398_vm7, %v3397_v5 }
0x104c   :  { %3201 = vmatprep.subr.bf16.mxu0 %v3397_v5 }
0x104e   :  { %3194 = vmatmul.mubr.msk.f32.vlgmr.msra.gmra.mrb[26].mxu0 %vm402_vm8, %v1776_v47 }
0x104f   :  { %3203 = vmatprep.mubr.msk.bf16.mxu0 %vm3398_vm7, %v3397_v5 }
0x111d   :  { %v1681_v49 = vpop.f32.mrb[24].mxu0 }
0x111e   :  { %v1685_v50 = vmul.f32 0.25, %v1681_v49  ;;  %v3185_v51 = vpop.f32.mrb[25].mxu0  ;;  %v3886_v49 = vld [vmem:[%s3999_s11 + $0x1] ss:$0 sm:$0xff] }
0x1120   :  { %v1686_v52 = vadd.f32 %v1685_v50, %v3638_v19 }
0x1121   :  { %v1849_v48 = vpop.f32.mrb[26].mxu0 }
0x1122   :  { %v1853_v53 = vmul.f32 0.25, %v1849_v48  ;;  %v3195_v54 = vpop.f32.mrb[27].mxu0  ;;  %v1687_v55 = vsel %vm111_vm0, %v1686_v52, -inf }
0x1123   :  { %1688 = vmax.xlane.f32.xlu1 %v1687_v55 }
0x1124   :  { %v1854_v56 = vadd.f32 %v1853_v53, %v3638_v19  ;;  %v3314_v19 = vld [vmem:[%s3998_s10 + $0x18] sm:$0xff]  }
0x1125   :  { %3202 = vmatpush3.bf16.msra.mxu0 %v3314_v19 }
0x1126   :  { %v1855_v57 = vsel %vm111_vm0, %v1854_v56, -inf  ;;  %3213 = vmatprep.subr.mxu0 %v3397_v5 }
0x1127   :  { %1856 = vmax.xlane.f32.xlu0 %v1855_v57 }
0x11b0   :  { %v1689_v58 = vpop.xlane.xlu1 %1688 }
0x11b1   :  { %v1690_v59 = vsub.f32 %v1686_v52, %v1689_v58 }
0x11b3   :  { %v1691_v60 = vmul.f32 1.442695, %v1690_v59 }
0x11b4   :  { %v1857_v61 = vpop.xlane.xlu0 %1856 }
0x11b5   :  { %3356 = vpow2.f32 %v1691_v60  ;;  %v1858_v0 = vsub.f32 %v1854_v56, %v1857_v61 }
0x11b7   :  { %v1859_v1 = vmul.f32 1.442695, %v1858_v0 }
0x11b9   :  { %3358 = vpow2.f32 %v1859_v1 }
0x11bf   :  { %v3357_v2 = vpop.eup %3356 }
0x11c0   :  { %v1693_v3 = vsel %vm111_vm0, %v3357_v2, 0.0 }
0x11c1   :  { %1694 = vadd.xlane.f32.xlu0 %v1693_v3 }
0x11c3   :  { %v3359_v4 = vpop.eup %3358 }
0x11c4   :  { %v1861_v6 = vsel %vm111_vm0, %v3359_v4, 0.0 }
0x11c5   :  { %1862 = vadd.xlane.f32.xlu1 %v1861_v6 }
0x11d6   :  { %1866 = vrot.lane.b32.xlu1 %v1597_v41, %s3403_s2 }
0x11d7   :  { %1698 = vrot.lane.b32.xlu0 %v1597_v41, %s3404_s4 }
0x11da   :  { %2042 = vrot.lane.b32.xlu1 %v3811_v44, %s3400_s28 }
0x11db   :  { %2210 = vrot.lane.b32.xlu0 %v3811_v44, %s3399_s7 }
0x11de   :  { %2208 = vrot.lane.b32.xlu1 %v3811_v44, %s3401_s30 }
0x124e   :  { %v1695_v9 = vpop.xlane.xlu0 %1694 }
0x124f   :  { %3360 = vrcp.f32 %v1695_v9 }
0x1252   :  { %v1863_v12 = vpop.xlane.xlu1 %1862  ;;  %v1699_v13 = vpop.permute.xlu0 %1698 }
0x1253   :  { %3362 = vrcp.f32 %v1863_v12  ;;  %3187 = vmatpush3.msra.mxu1 %v1699_v13 }
0x1254   :  { %3196 = vmatprep.subr.mxu1 %v3397_v5 }
0x1256   :  { %v1867_v16 = vpop.permute.xlu1 %1866  ;;  %v2211_v10 = vpop.permute.xlu0 %2210 }
0x1259   :  { %v3361_v63 = vpop.eup %3360 }
0x125a   :  { %v1697_v14 = vmul.f32 %v3361_v63, %v3357_v2  ;;  %v2043_v26 = vpop.permute.xlu1 %2042 }
0x125c   :  { %3189 = vmatmul.mubr.msk.f32.vlgmr.msra.gmra.mrb[18].mxu1 %vm111_vm0, %v1697_v14 }
0x125d   :  { %v3363_v17 = vpop.eup %3362  ;;  %3197 = vmatpush3.msra.mxu1 %v1867_v16  ;;  %3198 = vmatprep.mubr.msk.f32.mxu1 %vm3398_vm7, %v3397_v5 }
0x125e   :  { %v1865_v20 = vmul.f32 %v3363_v17, %v3359_v4  ;;  %3207 = vmatprep.subr.bf16.mxu1 %v3397_v5  ;;  %v2209_v27 = vpop.permute.xlu1 %2208 }
0x1260   :  { %3199 = vmatmul.mubr.msk.f32.vlgmr.msra.gmra.mrb[28].mxu1 %vm111_vm0, %v1865_v20 }
0x1261   :  { %3209 = vmatprep.mubr.msk.bf16.mxu1 %vm3398_vm7, %v3397_v5  ;;  %3208 = vmatpush3.bf16.msra.mxu1 %v3855_v21 }
0x1262   :  { %3218 = vmatprep.subr.mxu1 %v3397_v5 }
0x132f   :  { %v1770_v22 = vpop.f32.mrb[18].mxu1 }
0x1330   :  { %v1774_v23 = vpack.c.bf16 %v1770_v22, %v1770_v22  ;;  %v3190_v15 = vpop.f32.mrb[19].mxu1 }
0x1332   :  { %3210 = vmatmul.mubr.msk.bf16.vlgmr.msra.gmra.mrb[32].mxu1 %vm402_vm8, %v1774_v23 }
0x1333   :  { %v1938_v18 = vpop.f32.mrb[28].mxu1  ;;  %3220 = vmatprep.mubr.msk.f32.mxu1 %vm3398_vm7, %v3397_v5 }
0x1334   :  { %v1942_v24 = vpack.c.bf16 %v1938_v18, %v1938_v18  ;;  %v3200_v25 = vpop.f32.mrb[29].mxu1 }
0x1336   :  { %3204 = vmatmul.mubr.msk.bf16.vlgmr.msra.gmra.mrb[28].mxu0 %vm402_vm8, %v1942_v24 }
0x1337   :  { %3214 = vmatpush3.xpose.msk.msra.mxu0 %vm402_vm8, %v2043_v26  ;;  %3215 = vmatprep.mubr.msk.f32.mxu0 %vm3398_vm7, %v3397_v5 }
0x1338   :  { %3223 = vmatprep.subr.mxu0 %v3397_v5 }
0x133e   :  { %3216 = vmatmul.mubr.msk.f32.vlgmr.msra.gmra.mrb[32].mxu0 %vm402_vm8, %v3811_v44 }
0x133f   :  { %3224 = vmatpush3.xpose.msk.msra.mxu0 %vm402_vm8, %v2211_v10  ;;  %3225 = vmatprep.mubr.msk.f32.mxu0 %vm3398_vm7, %v3397_v5 }
0x1340   :  { %3233 = vmatprep.subr.bf16.mxu0 %v3397_v5 }
0x1342   :  { %3226 = vmatmul.mubr.msk.f32.vlgmr.msra.gmra.mrb[34].mxu0 %vm402_vm8, %v2209_v27 }
0x1343   :  { %3234 = vmatpush3.bf16.msra.mxu0 %v3314_v19  ;;  %3235 = vmatprep.mubr.msk.bf16.mxu0 %vm3398_vm7, %v3397_v5 }
0x1344   :  { %3245 = vmatprep.subr.bf16.mxu0 %v3397_v5 }
0x1405   :  { %v2035_v28 = vpop.f32.mrb[32].mxu1 }
0x1406   :  { %v3211_v29 = vpop.f32.mrb[33].mxu1 }
0x1407   :  { %v2038_v30 = vpop.f32.mrb[34].mxu1 }
0x1408   :  { %v3212_v31 = vpop.f32.mrb[35].mxu1 }
0x1409   :  { %v1986_v32 = vpop.f32.mrb[28].mxu0 }
0x140a   :  { %v2036_v33 = vadd.f32 %v2035_v28, %v1986_v32  ;;  %v3205_v62 = vpop.f32.mrb[29].mxu0 }
0x140b   :  { %v1989_v34 = vpop.f32.mrb[30].mxu0 }
0x140c   :  { %v3206_v35 = vpop.f32.mrb[31].mxu0  ;;  %v2470_v50 = vadd.f32 %v3886_v49, %v2036_v33 }
0x140d   :  { %v3316_v35 = vld [vmem:[%s4000_s14 + $0x10] sm:$0xff]  }
0x140e   :  { %v2472_v51 = vadd.f32 %v2470_v50, %v3799_v36 }
0x1410   :  { %v2478_v52 = vsel %vm280_vm6, %v2472_v51, 0.0 }
0x1411   :  { %v2114_v38 = vpop.f32.mrb[32].mxu0 }
0x1412   :  { %v2118_v39 = vmul.f32 0.25, %v2114_v38  ;;  %v3217_v40 = vpop.f32.mrb[33].mxu0  ;;  %v3317_v38 = vld [vmem:[%s4000_s14 + $0x18] sm:$0xff]  }
0x1414   :  { %v2119_v41 = vadd.f32 %v2118_v39, %v3693_v8 }
0x1415   :  { %v2282_v42 = vpop.f32.mrb[34].mxu0 }
0x1416   :  { %v2286_v43 = vmul.f32 0.25, %v2282_v42  ;;  %v3227_v7 = vpop.f32.mrb[35].mxu0  ;;  %v2120_v45 = vsel %vm111_vm0, %v2119_v41, -inf }
0x1417   :  { %2121 = vmax.xlane.f32.xlu0 %v2120_v45 }
0x1418   :  { %v2287_v46 = vadd.f32 %v2286_v43, %v3693_v8 }
0x141a   :  { %v2288_v47 = vsel %vm111_vm0, %v2287_v46, -inf }
0x141b   :  { %2289 = vmax.xlane.f32.xlu1 %v2288_v47 }
0x142c   :  { %2131 = vrot.lane.b32.xlu1 %v3811_v44, %s3404_s4 }
0x1450   :  { %2479 = vadd.xlane.f32.xlu1 %v2478_v52 }
0x14a4   :  { %v2122_v48 = vpop.xlane.xlu0 %2121 }
0x14a5   :  { %v2123_v8 = vsub.f32 %v2119_v41, %v2122_v48 }
0x14a7   :  { %v2124_v53 = vmul.f32 1.442695, %v2123_v8 }
0x14a8   :  { %v2290_v54 = vpop.xlane.xlu1 %2289 }
0x14a9   :  { %3364 = vpow2.f32 %v2124_v53  ;;  %v2291_v55 = vsub.f32 %v2287_v46, %v2290_v54  ;;  %v2937_v46 = vld [vmem:[%s4001_s12 + $0x1] ss:$0 sm:$0xff] }
0x14aa   :  { %v3318_v54 = vld [vmem:[%s4003_s16 + $0x20] sm:$0xff]  }
0x14ab   :  { %v2292_v56 = vmul.f32 1.442695, %v2291_v55  ;;  %v3319_v55 = vld [vmem:[%s4003_s16 + $0x28] sm:$0xff]  }
0x14ac   :  { %v2132_v57 = vpop.permute.xlu1 %2131 }
0x14ad   :  { %3366 = vpow2.f32 %v2292_v56  ;;  %3219 = vmatpush3.msra.mxu1 %v2132_v57  ;;  %v3320_v56 = vld [vmem:[%s4003_s16 + $0x30] sm:$0xff]   ;;  %v3321_v57 = vld [vmem:[%s4003_s16 + $0x38] sm:$0xff]  }
0x14ae   :  { %3228 = vmatprep.subr.mxu1 %v3397_v5 }
0x14b3   :  { %v3365_v58 = vpop.eup %3364 }
0x14b4   :  { %v2126_v59 = vsel %vm111_vm0, %v3365_v58, 0.0 }
0x14b5   :  { %2127 = vadd.xlane.f32.xlu0 %v2126_v59 }
0x14b7   :  { %v3367_v36 = vpop.eup %3366 }
0x14b8   :  { %v2294_v60 = vsel %vm111_vm0, %v3367_v36, 0.0 }
0x14b9   :  { %2295 = vadd.xlane.f32.xlu0 %v2294_v60 }
0x14cf   :  { %2299 = vrot.lane.b32.xlu0 %v3811_v44, %s3403_s2 }
0x14dd   :  { %v2480_v61 = vpop.xlane.xlu1 %2479 }
0x14de   :  { %v2484_v0 = vmul.f32 0.03125, %v2480_v61 }
0x14e0   :  { %v3896_v1 = vsub.f32 %v2472_v51, %v2484_v0  ;;  %v2938_v51 = vld [vmem:[%s4002_s13 + $0x1] ss:$0 sm:$0xff] }
0x14e2   :  { %v2488_v2 = vmul.f32 %v3896_v1, %v3896_v1 }
0x14e4   :  { %v2490_v3 = vsel %vm280_vm6, %v2488_v2, 0.0 }
0x14e5   :  { %2491 = vadd.xlane.f32.xlu1 %v2490_v3 }
0x1542   :  { %v2128_v4 = vpop.xlane.xlu0 %2127 }
0x1543   :  { %3368 = vrcp.f32 %v2128_v4 }
0x1546   :  { %v2296_v6 = vpop.xlane.xlu0 %2295 }
0x1547   :  { %3370 = vrcp.f32 %v2296_v6 }
0x154a   :  { %v2300_v12 = vpop.permute.xlu0 %2299 }
0x154d   :  { %v3369_v19 = vpop.eup %3368 }
0x154e   :  { %v2130_v9 = vmul.f32 %v3369_v19, %v3365_v58  ;;  %v2944_v58 = vld [vmem:[%s4004_s15 + $0x1] ss:$0 sm:$0xff] }
0x1550   :  { %3221 = vmatmul.mubr.msk.f32.vlgmr.msra.gmra.mrb[30].mxu1 %vm111_vm0, %v2130_v9 }
0x1551   :  { %v3371_v44 = vpop.eup %3370  ;;  %3229 = vmatpush3.msra.mxu1 %v2300_v12  ;;  %3230 = vmatprep.mubr.msk.f32.mxu1 %vm3398_vm7, %v3397_v5 }
0x1552   :  { %v2298_v13 = vmul.f32 %v3371_v44, %v3367_v36  ;;  %3239 = vmatprep.subr.bf16.mxu1 %v3397_v5 }
0x1554   :  { %3231 = vmatmul.mubr.msk.f32.vlgmr.msra.gmra.mrb[36].mxu1 %vm111_vm0, %v2298_v13 }
0x1555   :  { %3240 = vmatpush3.bf16.msra.mxu1 %v3855_v21  ;;  %3241 = vmatprep.mubr.msk.bf16.mxu1 %vm3398_vm7, %v3397_v5 }
0x1556   :  { %3253 = vmatprep.subr.bf16.mxu1 %v3397_v5 }
0x1623   :  { %v2203_v63 = vpop.f32.mrb[30].mxu1 }
0x1624   :  { %v2207_v14 = vpack.c.bf16 %v2203_v63, %v2203_v63  ;;  %v3222_v16 = vpop.f32.mrb[31].mxu1 }
0x1626   :  { %3242 = vmatmul.mubr.msk.bf16.vlgmr.msra.gmra.mrb[40].mxu1 %vm402_vm8, %v2207_v14 }
0x1627   :  { %v2371_v17 = vpop.f32.mrb[36].mxu1  ;;  %3261 = vmatprep.mubr.msk.bf16.mxu1 %vm3398_vm7, %v3397_v5  ;;  %3254 = vmatpush3.bf16.msra.mxu1 %v3318_v54 }
0x1628   :  { %v2375_v20 = vpack.c.bf16 %v2371_v17, %v2371_v17  ;;  %v3232_v22 = vpop.f32.mrb[37].mxu1  ;;  %3255 = vmatprep.subr.bf16.mxu1 %v3397_v5 }
0x162a   :  { %3236 = vmatmul.mubr.msk.bf16.vlgmr.msra.gmra.mrb[36].mxu0 %vm402_vm8, %v2375_v20 }
0x162b   :  { %3249 = vmatprep.mubr.msk.bf16.mxu0 %vm3398_vm7, %v3397_v5  ;;  %3246 = vmatpush3.bf16.msra.mxu0 %v3316_v35 }
0x162c   :  { %3247 = vmatprep.subr.bf16.mxu0 %v3397_v5  ;;  %3256 = vmatpush3.bf16.msra.mxu1 %v3319_v55 }
0x162d   :  { %3257 = vmatprep.subr.bf16.mxu1 %v3397_v5 }
0x162f   :  { %3248 = vmatpush3.bf16.msra.mxu0 %v3317_v38 }
0x1630   :  { %3265 = vmatprep.subr.bf16.mxu0 %v3397_v5  ;;  %3258 = vmatpush3.bf16.msra.mxu1 %v3320_v56 }
0x1631   :  { %3259 = vmatprep.subr.bf16.mxu1 %v3397_v5 }
0x1634   :  { %3260 = vmatpush3.bf16.msra.mxu1 %v3321_v57 }
0x16f9   :  { %v2456_v21 = vpop.f32.mrb[40].mxu1 }
0x16fa   :  { %v3243_v23 = vpop.f32.mrb[41].mxu1 }
0x16fb   :  { %v2459_v15 = vpop.f32.mrb[42].mxu1 }
0x16fc   :  { %v3244_v18 = vpop.f32.mrb[43].mxu1 }
0x16fd   :  { %v2413_v24 = vpop.f32.mrb[36].mxu0 }
0x16fe   :  { %v2457_v25 = vadd.f32 %v2456_v21, %v2413_v24  ;;  %v3237_v26 = vpop.f32.mrb[37].mxu0  ;;  %v2957_v24 = vld [vmem:[%s4005_s17 + $0x1] ss:$0 sm:$0xff] }
0x16ff   :  { %v2416_v10 = vpop.f32.mrb[38].mxu0 }
0x1700   :  { %v2471_v27 = vadd.f32 %v3886_v49, %v2457_v25  ;;  %v3238_v28 = vpop.f32.mrb[39].mxu0 }
0x1702   :  { %v2473_v29 = vadd.f32 %v2471_v27, %v3801_v37  ;;  %v2492_v37 = vpop.xlane.xlu1 %2491 }
0x1703   :  { %v2496_v39 = vmul.f32 0.03125, %v2492_v37 }
0x1704   :  { %v2481_v30 = vsel %vm280_vm6, %v2473_v29, 0.0 }
0x1705   :  { %2482 = vadd.xlane.f32.xlu0 %v2481_v30  ;;  %v2498_v40 = vadd.f32 1e-06, %v2496_v39 }
0x1707   :  { %3372 = vrsqrt.f32 %v2498_v40 }
0x1711   :  { %v3373_v7 = vpop.eup %3372 }
0x1712   :  { %v2502_v45 = vmul.f32 %v3373_v7, %v3896_v1  ;;  %v3322_v7 = vld [vmem:[%s4008_s20] sm:$0xff]  }
0x1714   :  { %v2510_v49 = vmul.f32 %v2937_v46, %v2502_v45  ;;  %v3323_v45 = vld [vmem:[%s4008_s20 + $0x8] sm:$0xff]  }
0x1716   :  { %v2518_v48 = vadd.f32 %v2938_v51, %v2510_v49 }
0x1792   :  { %v2483_v31 = vpop.xlane.xlu0 %2482 }
0x1793   :  { %v2485_v32 = vmul.f32 0.03125, %v2483_v31 }
0x1795   :  { %v2487_v33 = vsub.f32 %v2473_v29, %v2485_v32 }
0x1797   :  { %v2489_v62 = vmul.f32 %v2487_v33, %v2487_v33 }
0x1799   :  { %v2493_v34 = vsel %vm280_vm6, %v2489_v62, 0.0 }
0x179a   :  { %2494 = vadd.xlane.f32.xlu0 %v2493_v34 }
0x1827   :  { %v2495_v41 = vpop.xlane.xlu0 %2494 }
0x1828   :  { %v2497_v42 = vmul.f32 0.03125, %v2495_v41 }
0x182a   :  { %v2499_v43 = vadd.f32 1e-06, %v2497_v42 }
0x182c   :  { %3374 = vrsqrt.f32 %v2499_v43 }
0x1836   :  { %v3375_v47 = vpop.eup %3374 }
0x1837   :  { %v2503_v50 = vmul.f32 %v3375_v47, %v2487_v33 }
0x1839   :  { %v2511_v52 = vmul.f32 %v2937_v46, %v2503_v50 }
0x183b   :  { %v2519_v8 = vadd.f32 %v2938_v51, %v2511_v52 }
0x183d   :  { %v2520_v53 = vpack.c.bf16 %v2519_v8, %v2518_v48 }
0x183f   :  { %3250 = vmatmul.mubr.msk.bf16.vlgmr.msra.gmra.mrb[40].mxu0 %vm280_vm6, %v2520_v53 }
0x1840   :  { %3269 = vmatprep.mubr.msk.bf16.mxu0 %vm3398_vm7, %v3397_v5  ;;  %3266 = vmatpush3.bf16.msra.mxu0 %v3322_v7 }
0x1841   :  { %3267 = vmatprep.subr.bf16.mxu0 %v3397_v5  ;;  %v2966_v5 = vld [vmem:[%s4007_s19 + $0x1] ss:$0 sm:$0xff] }
0x1844   :  { %3268 = vmatpush3.bf16.msra.mxu0 %v3323_v45 }
0x1912   :  { %v2583_v59 = vpop.f32.mrb[40].mxu0 }
0x1913   :  { %v2584_v36 = vadd.f32 %v2944_v58, %v2583_v59  ;;  %v3251_v60 = vpop.f32.mrb[41].mxu0 }
0x1914   :  { %v2586_v61 = vpop.f32.mrb[42].mxu0  ;;  %v2967_v60 = vld [vmem:[%s4009_s21] ss:$0 sm:$0xff] }
0x1915   :  { %v2592_v0 = vmul.f32 0.044715, %v2584_v36  ;;  %v2587_v1 = vadd.f32 %v2944_v58, %v2586_v61  ;;  %v3252_v2 = vpop.f32.mrb[43].mxu0  ;;  %v2590_v20 = vmul.f32 0.5, %v2584_v36 }
0x1917   :  { %v2594_v3 = vmul.f32 %v2592_v0, %v2584_v36  ;;  %v2593_v4 = vmul.f32 0.044715, %v2587_v1  ;;  %v2591_v22 = vmul.f32 0.5, %v2587_v1 }
0x1919   :  { %v2596_v6 = vmul.f32 %v2594_v3, %v2584_v36  ;;  %v2595_v19 = vmul.f32 %v2593_v4, %v2587_v1 }
0x191b   :  { %v2598_v9 = vadd.f32 %v2596_v6, %v2584_v36  ;;  %v2597_v12 = vmul.f32 %v2595_v19, %v2587_v1 }
0x191d   :  { %v2600_v44 = vmul.f32 0.7978846, %v2598_v9  ;;  %v2599_v13 = vadd.f32 %v2597_v12, %v2587_v1 }
0x191f   :  { %3376 = vtanh.f32 %v2600_v44  ;;  %v2601_v63 = vmul.f32 0.7978846, %v2599_v13 }
0x1921   :  { %3378 = vtanh.f32 %v2601_v63 }
0x1929   :  { %v3377_v14 = vpop.eup %3376 }
0x192a   :  { %v2604_v16 = vadd.f32 1.0, %v3377_v14 }
0x192b   :  { %v3379_v17 = vpop.eup %3378 }
0x192c   :  { %v2605_v21 = vadd.f32 1.0, %v3379_v17  ;;  %v2606_v23 = vmul.f32 %v2604_v16, %v2590_v20 }
0x192e   :  { %v2607_v15 = vmul.f32 %v2605_v21, %v2591_v22 }
0x1930   :  { %v2608_v18 = vpack.c.bf16 %v2607_v15, %v2606_v23 }
0x1932   :  { %3262 = vmatmul.mubr.msk.bf16.vlgmr.msra.gmra.mrb[44].mxu1 %vm193_vm4, %v2608_v18 }
0x1a05   :  { %v2687_v25 = vpop.f32.mrb[44].mxu1 }
0x1a06   :  { %v2688_v26 = vadd.f32 %v2957_v24, %v2687_v25  ;;  %v3263_v10 = vpop.f32.mrb[45].mxu1 }
0x1a07   :  { %v2690_v27 = vpop.f32.mrb[46].mxu1 }
0x1a08   :  { %v2691_v28 = vadd.f32 %v2957_v24, %v2690_v27  ;;  %v3264_v29 = vpop.f32.mrb[47].mxu1  ;;  %v2694_v30 = vadd.f32 %v2688_v26, %v2518_v48 }
0x1a0a   :  { %v2700_v31 = vsel %vm280_vm6, %v2694_v30, 0.0  ;;  %v2695_v32 = vadd.f32 %v2691_v28, %v2519_v8  ;;  %v2965_v8 = vld [vmem:[%s4006_s18 + $0x1] ss:$0 sm:$0xff] }
0x1a0b   :  { %2701 = vadd.xlane.f32.xlu1 %v2700_v31 }
0x1a0c   :  { %v2703_v33 = vsel %vm280_vm6, %v2695_v32, 0.0 }
0x1a0d   :  { %2704 = vadd.xlane.f32.xlu0 %v2703_v33 }
0x1a98   :  { %v2702_v62 = vpop.xlane.xlu1 %2701 }
0x1a99   :  { %v2706_v34 = vmul.f32 0.03125, %v2702_v62 }
0x1a9a   :  { %v2705_v35 = vpop.xlane.xlu0 %2704 }
0x1a9b   :  { %v2708_v38 = vsub.f32 %v2694_v30, %v2706_v34  ;;  %v2707_v37 = vmul.f32 0.03125, %v2705_v35 }
0x1a9d   :  { %v2709_v39 = vsub.f32 %v2695_v32, %v2707_v37  ;;  %v2710_v40 = vmul.f32 %v2708_v38, %v2708_v38 }
0x1a9f   :  { %v2712_v41 = vsel %vm280_vm6, %v2710_v40, 0.0  ;;  %v2711_v42 = vmul.f32 %v2709_v39, %v2709_v39 }
0x1aa0   :  { %2713 = vadd.xlane.f32.xlu1 %v2712_v41 }
0x1aa1   :  { %v2715_v43 = vsel %vm280_vm6, %v2711_v42, 0.0 }
0x1aa2   :  { %2716 = vadd.xlane.f32.xlu0 %v2715_v43 }
0x1b2d   :  { %v2714_v46 = vpop.xlane.xlu1 %2713 }
0x1b2e   :  { %v2718_v47 = vmul.f32 0.03125, %v2714_v46 }
0x1b2f   :  { %v2717_v49 = vpop.xlane.xlu0 %2716 }
0x1b30   :  { %v2720_v50 = vadd.f32 1e-06, %v2718_v47  ;;  %v2719_v51 = vmul.f32 0.03125, %v2717_v49 }
0x1b32   :  { %3380 = vrsqrt.f32 %v2720_v50  ;;  %v2721_v52 = vadd.f32 1e-06, %v2719_v51 }
0x1b34   :  { %3382 = vrsqrt.f32 %v2721_v52 }
0x1b3c   :  { %v3381_v48 = vpop.eup %3380 }
0x1b3d   :  { %v2724_v53 = vmul.f32 %v3381_v48, %v2708_v38 }
0x1b3e   :  { %v3383_v54 = vpop.eup %3382 }
0x1b3f   :  { %v2732_v55 = vmul.f32 %v2965_v8, %v2724_v53  ;;  %v2725_v56 = vmul.f32 %v3383_v54, %v2709_v39 }
0x1b41   :  { %v2733_v57 = vmul.f32 %v2965_v8, %v2725_v56  ;;  %v2740_v58 = vadd.f32 %v2966_v5, %v2732_v55 }
0x1b43   :  { %v2741_v59 = vadd.f32 %v2966_v5, %v2733_v57 }
0x1b45   :  { %v2742_v36 = vpack.c.bf16 %v2741_v59, %v2740_v58 }
0x1b47   :  { %3270 = vmatmul.mubr.msk.bf16.vlgmr.msra.gmra.mrb[44].mxu0 %vm280_vm6, %v2742_v36 }
0x1c1a   :  { %v2803_v61 = vpop.f32.mrb[44].mxu0 }
0x1c1b   :  { %v2804_v0 = vadd.f32 %v2967_v60, %v2803_v61  ;;  %v3271_v1 = vpop.f32.mrb[45].mxu0 }
0x1c1c   :  { %v2806_v2 = vpop.f32.mrb[46].mxu0 }
0x1c1d   :  { %v2812_v3 = vmul.f32 0.044715, %v2804_v0  ;;  %v2807_v4 = vadd.f32 %v2967_v60, %v2806_v2  ;;  %v3272_v6 = vpop.f32.mrb[47].mxu0  ;;  %v2810_v22 = vmul.f32 0.5, %v2804_v0 }
0x1c1f   :  { %v2813_v19 = vmul.f32 0.044715, %v2807_v4  ;;  %v2814_v9 = vmul.f32 %v2812_v3, %v2804_v0  ;;  %v2811_v18 = vmul.f32 0.5, %v2807_v4 }
0x1c21   :  { %v2816_v12 = vmul.f32 %v2814_v9, %v2804_v0  ;;  %v2815_v44 = vmul.f32 %v2813_v19, %v2807_v4 }
0x1c23   :  { %v2818_v13 = vadd.f32 %v2816_v12, %v2804_v0  ;;  %v2817_v63 = vmul.f32 %v2815_v44, %v2807_v4 }
0x1c25   :  { %v2820_v14 = vmul.f32 0.7978846, %v2818_v13  ;;  %v2819_v16 = vadd.f32 %v2817_v63, %v2807_v4 }
0x1c27   :  { %3384 = vtanh.f32 %v2820_v14  ;;  %v2821_v17 = vmul.f32 0.7978846, %v2819_v16 }
0x1c29   :  { %3386 = vtanh.f32 %v2821_v17 }
0x1c31   :  { %v3385_v20 = vpop.eup %3384 }
0x1c32   :  { %v2824_v21 = vadd.f32 1.0, %v3385_v20 }
0x1c33   :  { %v3387_v23 = vpop.eup %3386 }
0x1c34   :  { %v2826_v15 = vmul.f32 %v2824_v21, %v2810_v22  ;;  %v2825_v24 = vadd.f32 1.0, %v3387_v23 }
0x1c36   :  { %v2829_v25 = vsel %vm2828_vm10, %v2826_v15, -1e+30  ;;  %v2827_v26 = vmul.f32 %v2825_v24, %v2811_v18 }
0x1c37   :  { %2831 = vmax.xlane.f32.xlu1 %v2829_v25 }
0x1c38   :  { %v2830_v10 = vsel %vm2828_vm10, %v2827_v26, -1e+30 }
0x1c39   :  { %2833 = vmax.xlane.f32.xlu0 %v2830_v10 }
0x1cc4   :  { %v2832_v27 = vpop.xlane.xlu1 %2831 }
0x1cc5   :  { %v2835_v28 = vsub.f32 %v2829_v25, %v2832_v27 }
0x1cc6   :  { %v2834_v29 = vpop.xlane.xlu0 %2833 }
0x1cc7   :  { %v2837_v30 = vmul.f32 1.442695, %v2835_v28  ;;  %v2836_v31 = vsub.f32 %v2830_v10, %v2834_v29 }
0x1cc9   :  { %3388 = vpow2.f32 %v2837_v30  ;;  %v2839_v32 = vmul.f32 1.442695, %v2836_v31 }
0x1ccb   :  { %3390 = vpow2.f32 %v2839_v32 }
0x1cd3   :  { %v3389_v33 = vpop.eup %3388 }
0x1cd4   :  { %2841 = vadd.xlane.f32.xlu1 %v3389_v33 }
0x1cd5   :  { %v3391_v62 = vpop.eup %3390 }
0x1cd6   :  { %2843 = vadd.xlane.f32.xlu0 %v3391_v62 }
0x1d61   :  { %v2842_v11 = vpop.xlane.xlu1 %2841 }
0x1d62   :  { %3392 = vrcp.f32 %v2842_v11 }
0x1d63   :  { %v2844_v34 = vpop.xlane.xlu0 %2843 }
0x1d64   :  { %3394 = vrcp.f32 %v2844_v34 }
0x1d6c   :  { %v3393_v35 = vpop.eup %3392 }
0x1d6d   :  { %v2847_v38 = vmul.f32 %v3393_v35, %v3389_v33 }
0x1d6e   :  { %v3395_v37 = vpop.eup %3394 }
0x1d6f   :  { %2849 = vst [vmem:[%s4010_s22] sm:$0xff] %v2847_v38  ;;  %v2848_v39 = vmul.f32 %v3395_v37, %v3391_v62 }
0x1d71   :  { %2850 = vst [vmem:[%s4010_s22 + $0x8] sm:$0xff] %v2848_v39 }

</bundles_post_ra>
